<compile_context>
chip_gen: v6e
topology: v6e:2x2x1
jax: 0.10.0
libtpu: 0.0.40
codegen_flags: <defaults>
</compile_context>

<pallas_src>
import jax
import jax.numpy as jnp
import numpy as np
from jax.experimental import pallas as pl
from jax.experimental.pallas import tpu as pltpu


# ----------------------------------------------------------------------------
# Tile-size selection (VMEM budget + grid-depth guarantees)
# ----------------------------------------------------------------------------
def _round_up(x, m):
    return ((x + m - 1) // m) * m


def _shrink_for_grid_depth(tile, m):
    # Keep >=4 grid steps while the tile stays >=128, and >=2 steps while it
    # stays >=64: feeds the software pipeline and v7x's two TensorCores.
    while tile > 128 and pl.cdiv(m, tile) < 4:
        tile //= 2
    while tile > 32 and pl.cdiv(m, tile) < 2:
        tile //= 2
    return tile


def _pick_tile_m(m, k, n, *, budget_bytes=8 * 1024 * 1024):
    # Double-buffered A (bf16) + out (bf16) tiles must fit the budget; B has a
    # constant index map and stays resident on top of that.
    tile = 512
    while tile > 16 and 2 * tile * (k + n) * 2 > budget_bytes:
        tile //= 2
    tile = _shrink_for_grid_depth(tile, m)
    return max(16, min(tile, _round_up(m, 16)))


def _pick_tile_m_fused(m, k, n1, n2, *, budget_bytes=8 * 1024 * 1024):
    # Fused fc+conv1: double-buffered A (bf16) + out (bf16) tiles plus the live
    # f32 fc activation (tile, n1) inside the kernel body.
    tile = 512
    while tile > 16 and 2 * tile * (k + n2) * 2 + tile * n1 * 4 > budget_bytes:
        tile //= 2
    tile = _shrink_for_grid_depth(tile, m)
    return max(16, min(tile, _round_up(m, 16)))


# ----------------------------------------------------------------------------
# Pallas kernels (bf16 operands, f32 MXU accumulation, bf16 stores)
# ----------------------------------------------------------------------------
def _matmul_kernel(a_ref, b_ref, o_ref):
    acc = jnp.dot(a_ref[...], b_ref[...], preferred_element_type=jnp.float32)
    o_ref[...] = acc.astype(o_ref.dtype)


def _fc_conv1_kernel(a_ref, wfc_ref, bfc_ref, w1_ref, b1_ref, o_ref):
    # fc: Linear (no activation in the module before conv1)
    h = jnp.dot(a_ref[...], wfc_ref[...], preferred_element_type=jnp.float32)
    h = (h + bfc_ref[...]).astype(jnp.bfloat16)
    # conv1 on a 1x1 spatial input == plain GEMM; bias + ReLU fused here.
    acc = jnp.dot(h, w1_ref[...], preferred_element_type=jnp.float32)
    acc = jnp.maximum(acc + b1_ref[...], 0.0)
    o_ref[...] = acc.astype(o_ref.dtype)


def matmul_bf16(a, b):
    """out = a @ b; bf16 operands, f32 accumulation, bf16 output.  Ragged last
    M tile handled by Pallas (OOB reads feed garbage rows whose stores are
    discarded; the GEMM is row-independent)."""
    m, k = a.shape
    k2, n = b.shape
    assert k == k2
    a = a.astype(jnp.bfloat16)
    b = b.astype(jnp.bfloat16)

    tile_m = _pick_tile_m(m, k, n)
    grid = (pl.cdiv(m, tile_m),)
    cost = pl.CostEstimate(flops=2 * m * k * n, transcendentals=0,
                           bytes_accessed=(m * k + k * n + m * n) * 2)
    return pl.pallas_call(
        _matmul_kernel,
        out_shape=jax.ShapeDtypeStruct((m, n), jnp.bfloat16),
        grid_spec=pltpu.PrefetchScalarGridSpec(
            num_scalar_prefetch=0,
            grid=grid,
            in_specs=[pl.BlockSpec((tile_m, k), lambda i: (i, 0)),   # A tile
                      pl.BlockSpec((k, n), lambda i: (0, 0))],       # resident B
            out_specs=pl.BlockSpec((tile_m, n), lambda i: (i, 0)),
        ),
        compiler_params=pltpu.CompilerParams(
            dimension_semantics=("parallel",),
            vmem_limit_bytes=32 * 1024 * 1024),
        cost_estimate=cost,
    )(a, b)


def fc_conv1_fused(a, w_fc, b_fc, w1, b1_tiled):
    """out = relu((a @ w_fc + b_fc) @ w1 + b1) in a single pallas_call.
    a: (M, F) bf16; w_fc: (F, N1) bf16; b_fc: (1, N1) f32;
    w1: (N1, N2) bf16; b1_tiled: (1, N2) f32.  Output (M, N2) bf16."""
    m, k = a.shape
    _, n1 = w_fc.shape
    _, n2 = w1.shape

    tile_m = _pick_tile_m_fused(m, k, n1, n2)
    grid = (pl.cdiv(m, tile_m),)
    cost = pl.CostEstimate(
        flops=2 * m * (k * n1 + n1 * n2), transcendentals=0,
        bytes_accessed=(m * k + k * n1 + n1 * n2 + m * n2) * 2 + (n1 + n2) * 4)
    return pl.pallas_call(
        _fc_conv1_kernel,
        out_shape=jax.ShapeDtypeStruct((m, n2), jnp.bfloat16),
        grid_spec=pltpu.PrefetchScalarGridSpec(
            num_scalar_prefetch=0,
            grid=grid,
            in_specs=[pl.BlockSpec((tile_m, k), lambda i: (i, 0)),
                      pl.BlockSpec((k, n1), lambda i: (0, 0)),
                      pl.BlockSpec((1, n1), lambda i: (0, 0)),
                      pl.BlockSpec((n1, n2), lambda i: (0, 0)),
                      pl.BlockSpec((1, n2), lambda i: (0, 0))],
            out_specs=pl.BlockSpec((tile_m, n2), lambda i: (i, 0)),
        ),
        compiler_params=pltpu.CompilerParams(
            dimension_semantics=("parallel",),
            vmem_limit_bytes=32 * 1024 * 1024),
        cost_estimate=cost,
    )(a.astype(jnp.bfloat16), w_fc, b_fc, w1, b1_tiled)


# ----------------------------------------------------------------------------
# col2im overlap-add (pure data movement; f32 accumulation over bf16 taps)
# ----------------------------------------------------------------------------
def _col2im_overlap_add(y, stride):
    """y: (N, IH, IW, K, K, OC) bf16.
    out[n, s*ih+kh, s*iw+kw, oc] += y[n, ih, iw, kh, kw, oc]   (f32 acc)."""
    n, ih, iw, k, _, oc = y.shape
    oh = (ih - 1) * stride + k
    ow = (iw - 1) * stride + k
    qh = -(-oh // stride)                       # rows per sub-pixel phase
    qw = -(-ow // stride)
    pf = -(-k // stride) - 1                    # (max taps per phase) - 1
    ypad = jnp.pad(
        y, ((0, 0),
            (pf, max(0, qh - ih)),
            (pf, max(0, qw - iw)),
            (0, 0), (0, 0), (0, 0)))

    rows = []
    for rh in range(stride):
        cols = []
        for rw in range(stride):
            acc = jnp.zeros((n, qh, qw, oc), jnp.float32)
            for kh in range(rh, k, stride):
                jh = (kh - rh) // stride
                for kw in range(rw, k, stride):
                    jw = (kw - rw) // stride
                    acc = acc + ypad[:, pf - jh:pf - jh + qh,
                                     pf - jw:pf - jw + qw, kh, kw, :]
            cols.append(acc)
        rows.append(jnp.stack(cols, axis=-2))    # (N, QH, QW, s, OC)
    out = jnp.stack(rows, axis=2)                # (N, QH, s, QW, s, OC)
    out = out.reshape(n, qh * stride, qw * stride, oc)
    return out[:, :oh, :ow, :]


# ----------------------------------------------------------------------------
# ConvTranspose2d (stride s, no padding) = Pallas GEMM + col2im + bias/ReLU
# ----------------------------------------------------------------------------
def conv_transpose2d(x_nhwc, w_mat, b, *, k, oc, stride, relu, out_dtype):
    """x_nhwc: (N, IH, IW, IC) bf16; w_mat: (IC, K*K*OC) bf16; b: (OC,) f32."""
    n, ih, iw, ic = x_nhwc.shape
    a = x_nhwc.reshape(n * ih * iw, ic)
    y = matmul_bf16(a, w_mat)                    # (N*IH*IW, K*K*OC) bf16
    y = y.reshape(n, ih, iw, k, k, oc)
    out = _col2im_overlap_add(y, stride)         # (N, OH, OW, OC) f32
    out = out + b.reshape(1, 1, 1, oc)
    if relu:
        out = jnp.maximum(out, 0.0)
    return out.astype(out_dtype)                 # bf16 for next GEMM's A


# ----------------------------------------------------------------------------
# Parameter preprocessing (one-time, hoisted out of the forward)
# ----------------------------------------------------------------------------
def preprocess_params(params):
    def conv_w(w):
        # W_mat[ic, (kh, kw, oc)] = W[ic, oc, kh, kw].  No spatial flip:
        # out[s*ih+kh, s*iw+kw] += x[ih,iw,ic] * W[ic,oc,kh,kw] is exactly
        # PyTorch ConvTranspose2d.
        ic, oc, kk, _ = w.shape
        return jnp.transpose(w, (0, 2, 3, 1)).reshape(ic, kk * kk * oc).astype(jnp.bfloat16)

    k1 = params["w1"].shape[-1]
    return {
        "fc_w_t": jnp.transpose(params["fc_w"]).astype(jnp.bfloat16),
        "fc_b": params["fc_b"].reshape(1, -1).astype(jnp.float32),
        "w1": conv_w(params["w1"]),
        # conv1 bias broadcast over (kh, kw, oc) columns for in-kernel fusion.
        "b1t": jnp.tile(params["b1"], k1 * k1).reshape(1, -1).astype(jnp.float32),
        "w2": conv_w(params["w2"]), "b2": params["b2"].astype(jnp.float32),
        "w3": conv_w(params["w3"]), "b3": params["b3"].astype(jnp.float32),
        "w4": conv_w(params["w4"]), "b4": params["b4"].astype(jnp.float32),
    }


# ----------------------------------------------------------------------------
# ConvDecoder forward
# ----------------------------------------------------------------------------
def conv_decoder_forward(features, pp, depth):
    """features: (T, B, feature_dim) -> mean of shape (T, B, 3, 64, 64)."""
    t, bsz, fdim = features.shape
    x = features.reshape(t * bsz, fdim).astype(jnp.bfloat16)

    # Fused fc + conv1 (1x1 spatial => conv1's GEMM output IS the conv1
    # activation; bias + ReLU fused in the kernel epilogue, bf16 output).
    y = fc_conv1_fused(x, pp["fc_w_t"], pp["fc_b"], pp["w1"], pp["b1t"])
    x = y.reshape(t * bsz, 5, 5, 4 * depth)      # (N, 5, 5, 4*depth) bf16

    x = conv_transpose2d(x, pp["w2"], pp["b2"], k=5, oc=2 * depth, stride=2,
                         relu=True, out_dtype=jnp.bfloat16)
    x = conv_transpose2d(x, pp["w3"], pp["b3"], k=6, oc=1 * depth, stride=2,
                         relu=True, out_dtype=jnp.bfloat16)
    mean = conv_transpose2d(x, pp["w4"], pp["b4"], k=6, oc=3, stride=2,
                            relu=False, out_dtype=jnp.float32)

    mean = jnp.transpose(mean, (0, 3, 1, 2))     # NHWC -> NCHW
    assert mean.shape[-3:] == (3, 64, 64), mean.shape
    mean = mean.reshape(t, bsz, 3, 64, 64)
    # TODO(synk): torch.distributions Independent(Normal(mean, 1.0)) has no
    # Pallas equivalent; the mean tensor fully determines it, so we return it.
    return mean


# ----------------------------------------------------------------------------
# Pure-JAX reference (XLA conv path) for correctness check
# ----------------------------------------------------------------------------
def _conv_transpose2d_ref(x_nchw, w, b, stride):
    k = w.shape[-1]
    rhs = jnp.transpose(w, (1, 0, 2, 3))[:, :, ::-1, ::-1]   # (OC, IC, K, K)
    out = jax.lax.conv_general_dilated(
        x_nchw, rhs, window_strides=(1, 1),
        padding=[(k - 1, k - 1), (k - 1, k - 1)],
        lhs_dilation=(stride, stride),
        dimension_numbers=("NCHW", "OIHW", "NCHW"))
    return out + b.reshape(1, -1, 1, 1)


def _conv_decoder_ref(features, params, depth):
    t, bsz, fdim = features.shape
    x = features.reshape(t * bsz, fdim) @ params["fc_w"].T + params["fc_b"]
    x = x.reshape(t * bsz, 32 * depth, 1, 1)
    x = jax.nn.relu(_conv_transpose2d_ref(x, params["w1"], params["b1"], 2))
    x = jax.nn.relu(_conv_transpose2d_ref(x, params["w2"], params["b2"], 2))
    x = jax.nn.relu(_conv_transpose2d_ref(x, params["w3"], params["b3"], 2))
    mean = _conv_transpose2d_ref(x, params["w4"], params["b4"], 2)
    return mean.reshape(t, bsz, 3, 64, 64)


# ----------------------------------------------------------------------------
# Parameter init (deterministic, PyTorch shapes)
# ----------------------------------------------------------------------------
def init_params(key, feature_dim, depth):
    ks = jax.random.split(key, 10)
    s = 0.05
    return {
        "fc_w": s * jax.random.normal(ks[0], (32 * depth, feature_dim), jnp.float32),
        "fc_b": s * jax.random.normal(ks[1], (32 * depth,), jnp.float32),
        "w1": s * jax.random.normal(ks[2], (32 * depth, 4 * depth, 5, 5), jnp.float32),
        "b1": s * jax.random.normal(ks[3], (4 * depth,), jnp.float32),
        "w2": s * jax.random.normal(ks[4], (4 * depth, 2 * depth, 5, 5), jnp.float32),
        "b2": s * jax.random.normal(ks[5], (2 * depth,), jnp.float32),
        "w3": s * jax.random.normal(ks[6], (2 * depth, 1 * depth, 6, 6), jnp.float32),
        "b3": s * jax.random.normal(ks[7], (1 * depth,), jnp.float32),
        "w4": s * jax.random.normal(ks[8], (1 * depth, 3, 6, 6), jnp.float32),
        "b4": s * jax.random.normal(ks[9], (3,), jnp.float32),
    }


if __name__ == "__main__":
    T, B, FEATURE_DIM, DEPTH = 2, 2, 32, 8

    key = jax.random.PRNGKey(0)
    pkey, xkey = jax.random.split(key)
    params = init_params(pkey, FEATURE_DIM, DEPTH)
    features = jax.random.normal(xkey, (T, B, FEATURE_DIM), jnp.float32)

    pp = preprocess_params(params)                 # one-time layout transforms
    fwd = jax.jit(conv_decoder_forward, static_argnums=(2,))
    mean = jax.block_until_ready(fwd(features, pp, DEPTH))
    assert mean.shape == (T, B, 3, 64, 64), mean.shape

    ref = jax.block_until_ready(_conv_decoder_ref(features, params, DEPTH))
    np.testing.assert_allclose(np.asarray(mean), np.asarray(ref),
                               rtol=2e-2, atol=1e-2)
    print("KERNEL_OK")
</pallas_src>

<mosaic_0001>
module attributes {stable_mosaic.version = 11 : i64} {
  func.func @_fc_conv1_kernel(%arg0: i32, %arg1: memref<16x32xbf16, #tpu.memory_space<vmem>>, %arg2: memref<32x256xbf16, #tpu.memory_space<vmem>>, %arg3: memref<1x256xf32, #tpu.memory_space<vmem>>, %arg4: memref<256x800xbf16, #tpu.memory_space<vmem>>, %arg5: memref<1x800xf32, #tpu.memory_space<vmem>>, %arg6: memref<16x800xbf16, #tpu.memory_space<vmem>>) attributes {dimension_semantics = [#tpu.dimension_semantics<parallel>], iteration_bounds = array<i64: 1>, scalar_prefetch = 0 : i64, scratch_operands = 0 : i64, tpu.core_type = #tpu.core_type<tc>, window_params = [{transform_indices = @transform_0, window_bounds = array<i64: 16, 32>}, {pipeline_mode = #tpu.pipeline_mode<synchronous>, transform_indices = @transform_1, window_bounds = array<i64: 32, 256>}, {pipeline_mode = #tpu.pipeline_mode<synchronous>, transform_indices = @transform_2, window_bounds = array<i64: 1, 256>}, {pipeline_mode = #tpu.pipeline_mode<synchronous>, transform_indices = @transform_3, window_bounds = array<i64: 256, 800>}, {pipeline_mode = #tpu.pipeline_mode<synchronous>, transform_indices = @transform_4, window_bounds = array<i64: 1, 800>}, {transform_indices = @transform_5, window_bounds = array<i64: 16, 800>}]} {
    %c0 = arith.constant 0 : index
    %c0_0 = arith.constant 0 : index
    %0 = vector.load %arg1[%c0, %c0_0] : memref<16x32xbf16, #tpu.memory_space<vmem>>, vector<16x32xbf16>
    %c0_1 = arith.constant 0 : index
    %c0_2 = arith.constant 0 : index
    %1 = vector.load %arg2[%c0_1, %c0_2] : memref<32x256xbf16, #tpu.memory_space<vmem>>, vector<32x256xbf16>
    %cst = arith.constant dense<0.000000e+00> : vector<16x256xf32>
    %2 = tpu.matmul %0, %1, %cst {dimension_numbers = #tpu.dot_dimension_numbers<[1], [0], [0], [1], [0, 0, 1, 1], [], []>} : vector<16x32xbf16>, vector<32x256xbf16>, vector<16x256xf32> -> vector<16x256xf32>
    %c0_3 = arith.constant 0 : index
    %c0_4 = arith.constant 0 : index
    %3 = vector.load %arg3[%c0_3, %c0_4] : memref<1x256xf32, #tpu.memory_space<vmem>>, vector<1x256xf32>
    %4 = vector.broadcast %3 : vector<1x256xf32> to vector<16x256xf32>
    %5 = arith.addf %2, %4 : vector<16x256xf32>
    %6 = arith.truncf %5 : vector<16x256xf32> to vector<16x256xbf16>
    %c0_5 = arith.constant 0 : index
    %c0_6 = arith.constant 0 : index
    %7 = vector.load %arg4[%c0_5, %c0_6] : memref<256x800xbf16, #tpu.memory_space<vmem>>, vector<256x800xbf16>
    %cst_7 = arith.constant dense<0.000000e+00> : vector<16x800xf32>
    %8 = tpu.matmul %6, %7, %cst_7 {dimension_numbers = #tpu.dot_dimension_numbers<[1], [0], [0], [1], [0, 0, 1, 1], [], []>} : vector<16x256xbf16>, vector<256x800xbf16>, vector<16x800xf32> -> vector<16x800xf32>
    %c0_8 = arith.constant 0 : index
    %c0_9 = arith.constant 0 : index
    %9 = vector.load %arg5[%c0_8, %c0_9] : memref<1x800xf32, #tpu.memory_space<vmem>>, vector<1x800xf32>
    %10 = vector.broadcast %9 : vector<1x800xf32> to vector<16x800xf32>
    %11 = arith.addf %8, %10 : vector<16x800xf32>
    %cst_10 = arith.constant 0.000000e+00 : f32
    %12 = vector.broadcast %cst_10 : f32 to vector<16x800xf32>
    %13 = arith.maximumf %11, %12 : vector<16x800xf32>
    %14 = arith.truncf %13 : vector<16x800xf32> to vector<16x800xbf16>
    %c0_11 = arith.constant 0 : index
    %c0_12 = arith.constant 0 : index
    %15 = vector.load %arg6[%c0_11, %c0_12] : memref<16x800xbf16, #tpu.memory_space<vmem>>, vector<16x800xbf16>
    tpu.vector_store %arg6[%c0_11, %c0_12], %14 {strides = array<i32>} : memref<16x800xbf16, #tpu.memory_space<vmem>>, vector<16x800xbf16>,
    return
  }
  func.func @transform_0(%arg0: i32) -> (i32, i32) {
    %c0_i32 = arith.constant 0 : i32
    %c0_i32_0 = arith.constant 0 : i32
    return %arg0, %c0_i32 : i32, i32
  }
  func.func @transform_1(%arg0: i32) -> (i32, i32) {
    %c0_i32 = arith.constant 0 : i32
    %c0_i32_0 = arith.constant 0 : i32
    %c0_i32_1 = arith.constant 0 : i32
    return %c0_i32, %c0_i32_0 : i32, i32
  }
  func.func @transform_2(%arg0: i32) -> (i32, i32) {
    %c0_i32 = arith.constant 0 : i32
    %c0_i32_0 = arith.constant 0 : i32
    %c0_i32_1 = arith.constant 0 : i32
    return %c0_i32, %c0_i32_0 : i32, i32
  }
  func.func @transform_3(%arg0: i32) -> (i32, i32) {
    %c0_i32 = arith.constant 0 : i32
    %c0_i32_0 = arith.constant 0 : i32
    %c0_i32_1 = arith.constant 0 : i32
    return %c0_i32, %c0_i32_0 : i32, i32
  }
  func.func @transform_4(%arg0: i32) -> (i32, i32) {
    %c0_i32 = arith.constant 0 : i32
    %c0_i32_0 = arith.constant 0 : i32
    %c0_i32_1 = arith.constant 0 : i32
    return %c0_i32, %c0_i32_0 : i32, i32
  }
  func.func @transform_5(%arg0: i32) -> (i32, i32) {
    %c0_i32 = arith.constant 0 : i32
    %c0_i32_0 = arith.constant 0 : i32
    return %arg0, %c0_i32 : i32, i32
  }
}

module attributes {stable_mosaic.version = 11 : i64} {
  func.func @_matmul_kernel(%arg0: i32, %arg1: memref<64x32xbf16, #tpu.memory_space<vmem>>, %arg2: memref<32x400xbf16, #tpu.memory_space<vmem>>, %arg3: memref<64x400xbf16, #tpu.memory_space<vmem>>) attributes {dimension_semantics = [#tpu.dimension_semantics<parallel>], iteration_bounds = array<i64: 2>, scalar_prefetch = 0 : i64, scratch_operands = 0 : i64, tpu.core_type = #tpu.core_type<tc>, window_params = [{transform_indices = @transform_0, window_bounds = array<i64: 64, 32>}, {pipeline_mode = #tpu.pipeline_mode<synchronous>, transform_indices = @transform_1, window_bounds = array<i64: 32, 400>}, {transform_indices = @transform_2, window_bounds = array<i64: 64, 400>}]} {
    %c0 = arith.constant 0 : index
    %c0_0 = arith.constant 0 : index
    %0 = vector.load %arg1[%c0, %c0_0] : memref<64x32xbf16, #tpu.memory_space<vmem>>, vector<64x32xbf16>
    %c0_1 = arith.constant 0 : index
    %c0_2 = arith.constant 0 : index
    %1 = vector.load %arg2[%c0_1, %c0_2] : memref<32x400xbf16, #tpu.memory_space<vmem>>, vector<32x400xbf16>
    %cst = arith.constant dense<0.000000e+00> : vector<64x400xf32>
    %2 = tpu.matmul %0, %1, %cst {dimension_numbers = #tpu.dot_dimension_numbers<[1], [0], [0], [1], [0, 0, 1, 1], [], []>} : vector<64x32xbf16>, vector<32x400xbf16>, vector<64x400xf32> -> vector<64x400xf32>
    %3 = arith.truncf %2 : vector<64x400xf32> to vector<64x400xbf16>
    %c0_3 = arith.constant 0 : index
    %c0_4 = arith.constant 0 : index
    %4 = vector.load %arg3[%c0_3, %c0_4] : memref<64x400xbf16, #tpu.memory_space<vmem>>, vector<64x400xbf16>
    tpu.vector_store %arg3[%c0_3, %c0_4], %3 {strides = array<i32>} : memref<64x400xbf16, #tpu.memory_space<vmem>>, vector<64x400xbf16>,
    return
  }
  func.func @transform_0(%arg0: i32) -> (i32, i32) {
    %c0_i32 = arith.constant 0 : i32
    %c0_i32_0 = arith.constant 0 : i32
    return %arg0, %c0_i32 : i32, i32
  }
  func.func @transform_1(%arg0: i32) -> (i32, i32) {
    %c0_i32 = arith.constant 0 : i32
    %c0_i32_0 = arith.constant 0 : i32
    %c0_i32_1 = arith.constant 0 : i32
    return %c0_i32, %c0_i32_0 : i32, i32
  }
  func.func @transform_2(%arg0: i32) -> (i32, i32) {
    %c0_i32 = arith.constant 0 : i32
    %c0_i32_0 = arith.constant 0 : i32
    return %arg0, %c0_i32 : i32, i32
  }
}

module attributes {stable_mosaic.version = 11 : i64} {
  func.func @_matmul_kernel(%arg0: i32, %arg1: memref<128x16xbf16, #tpu.memory_space<vmem>>, %arg2: memref<16x288xbf16, #tpu.memory_space<vmem>>, %arg3: memref<128x288xbf16, #tpu.memory_space<vmem>>) attributes {dimension_semantics = [#tpu.dimension_semantics<parallel>], iteration_bounds = array<i64: 6>, scalar_prefetch = 0 : i64, scratch_operands = 0 : i64, tpu.core_type = #tpu.core_type<tc>, window_params = [{transform_indices = @transform_0, window_bounds = array<i64: 128, 16>}, {pipeline_mode = #tpu.pipeline_mode<synchronous>, transform_indices = @transform_1, window_bounds = array<i64: 16, 288>}, {transform_indices = @transform_2, window_bounds = array<i64: 128, 288>}]} {
    %c0 = arith.constant 0 : index
    %c0_0 = arith.constant 0 : index
    %0 = vector.load %arg1[%c0, %c0_0] : memref<128x16xbf16, #tpu.memory_space<vmem>>, vector<128x16xbf16>
    %c0_1 = arith.constant 0 : index
    %c0_2 = arith.constant 0 : index
    %1 = vector.load %arg2[%c0_1, %c0_2] : memref<16x288xbf16, #tpu.memory_space<vmem>>, vector<16x288xbf16>
    %cst = arith.constant dense<0.000000e+00> : vector<128x288xf32>
    %2 = tpu.matmul %0, %1, %cst {dimension_numbers = #tpu.dot_dimension_numbers<[1], [0], [0], [1], [0, 0, 1, 1], [], []>} : vector<128x16xbf16>, vector<16x288xbf16>, vector<128x288xf32> -> vector<128x288xf32>
    %3 = arith.truncf %2 : vector<128x288xf32> to vector<128x288xbf16>
    %c0_3 = arith.constant 0 : index
    %c0_4 = arith.constant 0 : index
    %4 = vector.load %arg3[%c0_3, %c0_4] : memref<128x288xbf16, #tpu.memory_space<vmem>>, vector<128x288xbf16>
    tpu.vector_store %arg3[%c0_3, %c0_4], %3 {strides = array<i32>} : memref<128x288xbf16, #tpu.memory_space<vmem>>, vector<128x288xbf16>,
    return
  }
  func.func @transform_0(%arg0: i32) -> (i32, i32) {
    %c0_i32 = arith.constant 0 : i32
    %c0_i32_0 = arith.constant 0 : i32
    return %arg0, %c0_i32 : i32, i32
  }
  func.func @transform_1(%arg0: i32) -> (i32, i32) {
    %c0_i32 = arith.constant 0 : i32
    %c0_i32_0 = arith.constant 0 : i32
    %c0_i32_1 = arith.constant 0 : i32
    return %c0_i32, %c0_i32_0 : i32, i32
  }
  func.func @transform_2(%arg0: i32) -> (i32, i32) {
    %c0_i32 = arith.constant 0 : i32
    %c0_i32_0 = arith.constant 0 : i32
    return %arg0, %c0_i32 : i32, i32
  }
}

module attributes {stable_mosaic.version = 11 : i64} {
  func.func @_matmul_kernel(%arg0: i32, %arg1: memref<512x8xbf16, #tpu.memory_space<vmem>>, %arg2: memref<8x108xbf16, #tpu.memory_space<vmem>>, %arg3: memref<512x108xbf16, #tpu.memory_space<vmem>>) attributes {dimension_semantics = [#tpu.dimension_semantics<parallel>], iteration_bounds = array<i64: 8>, scalar_prefetch = 0 : i64, scratch_operands = 0 : i64, tpu.core_type = #tpu.core_type<tc>, window_params = [{transform_indices = @transform_0, window_bounds = array<i64: 512, 8>}, {pipeline_mode = #tpu.pipeline_mode<synchronous>, transform_indices = @transform_1, window_bounds = array<i64: 8, 108>}, {transform_indices = @transform_2, window_bounds = array<i64: 512, 108>}]} {
    %c0 = arith.constant 0 : index
    %c0_0 = arith.constant 0 : index
    %0 = vector.load %arg1[%c0, %c0_0] : memref<512x8xbf16, #tpu.memory_space<vmem>>, vector<512x8xbf16>
    %c0_1 = arith.constant 0 : index
    %c0_2 = arith.constant 0 : index
    %1 = vector.load %arg2[%c0_1, %c0_2] : memref<8x108xbf16, #tpu.memory_space<vmem>>, vector<8x108xbf16>
    %cst = arith.constant dense<0.000000e+00> : vector<512x108xf32>
    %2 = tpu.matmul %0, %1, %cst {dimension_numbers = #tpu.dot_dimension_numbers<[1], [0], [0], [1], [0, 0, 1, 1], [], []>} : vector<512x8xbf16>, vector<8x108xbf16>, vector<512x108xf32> -> vector<512x108xf32>
    %3 = arith.truncf %2 : vector<512x108xf32> to vector<512x108xbf16>
    %c0_3 = arith.constant 0 : index
    %c0_4 = arith.constant 0 : index
    %4 = vector.load %arg3[%c0_3, %c0_4] : memref<512x108xbf16, #tpu.memory_space<vmem>>, vector<512x108xbf16>
    tpu.vector_store %arg3[%c0_3, %c0_4], %3 {strides = array<i32>} : memref<512x108xbf16, #tpu.memory_space<vmem>>, vector<512x108xbf16>,
    return
  }
  func.func @transform_0(%arg0: i32) -> (i32, i32) {
    %c0_i32 = arith.constant 0 : i32
    %c0_i32_0 = arith.constant 0 : i32
    return %arg0, %c0_i32 : i32, i32
  }
  func.func @transform_1(%arg0: i32) -> (i32, i32) {
    %c0_i32 = arith.constant 0 : i32
    %c0_i32_0 = arith.constant 0 : i32
    %c0_i32_1 = arith.constant 0 : i32
    return %c0_i32, %c0_i32_0 : i32, i32
  }
  func.func @transform_2(%arg0: i32) -> (i32, i32) {
    %c0_i32 = arith.constant 0 : i32
    %c0_i32_0 = arith.constant 0 : i32
    return %arg0, %c0_i32 : i32, i32
  }
}

</mosaic_0001>

<bundles_post_ra>
// kernel: conv_decoder_forward.5
= control target key start
LH: loop header
LB: loop body
LE: loop exit
PB: predicated region body
PF: predicated region fallthrough
CT: control target
= control target key end

     0   :  { %7 = vsyncpa [#allocation3], 0  ;;  %s1072_s9 = smov 0   ;;  %s1074_s10 = smov 0   ;;  %s1278_s0 = inlined_call_operand.vmem [shape: bf16[100,32], index: 0, kind: input, shape index: {}]   ;;  %s1279_s1 = inlined_call_operand.hbm [shape: bf16[32,400], index: 1, kind: input, shape index: {}]   ;;  %s1280_s2 = inlined_call_operand.vmem [shape: bf16[100,400], index: 2, kind: output, shape index: {}]  }
   0x1   :  { %s1076_s11 = smov 0  }
   0x2 LB: > { %s1085_s12 = sadd.s32 4294967295, %s1019_s11   ;;  %s1087_s13 = sadd.s32 1, %s1019_s11   ;;  %s1019_s11 = sphi %s1076_s11, %s1290_s11   ;;  %s1015_s10 = sphi %s1074_s10, %s1289_s10   ;;  %s1011_s9 = sphi %s1072_s9, %s1288_s9  }
   0x3   : > { %s64_s14 = ssub.s32 %s1019_s11, %s1087_s13  ;;  %s67_s15 = sadd.s32 1, %s1015_s10 }
   0x4   : > { %p65_p0 = scmp.eq.s32.totalorder %s64_s14, 0  ;;  %p77_p1 = scmp.ne.s32.totalorder %s1015_s10, %s1011_s9 }
   0x5   : > { %p78_p2 = scmp.eq.s32.totalorder %s1085_s12, 1  ;;  %p733_p3 = scmp.ge.s32.totalorder %s1019_s11, 1 }
   0x6   : > { %s1095_s16 = scalar_select %p65_p0, %s1015_s10, %s67_s15  }
   0x7   : > { %p1097_p4 = por %p78_p2, %p77_p1  ;;  %p91_p5 = scmp.lt.s32.totalorder %s1019_s11, 3 }
   0x8   : > { %p825_p6 = scmp.eq.s32.totalorder %s1085_s12, 0  ;;  %s1053_s19 = smov [#allocation2]  }
   0x9   : > { %p1102_p7 = pnand %p733_p3, %p91_p5  ;;  %s103_s20 = sshll.u32 %s1053_s19, 4  ;;  %s104_s20 = int_to_ptr.vmem [resolvable:$true] %s103_s20 }
   0xa   : > { %s946_s21 = scalar_lea.vmem %s104_s20, 1024  ;;  %p954_p0 = scmp.lt.s32.totalorder %s104_s20, %s104_s20 }
   0xb   : > { %p821_p8 = pneg %p1102_p7  ;;  %p947_p11 = scmp.ne.s32.totalorder %s104_s20, %s946_s21 }
   0xc   : > { %p955_p1 = scmp.lt.s32.totalorder %s946_s21, %s946_s21 }
   0xd   : > { %p822_p9 = pnand %p825_p6, %p821_p8 }
   0xe   : > { %p956_p2 = por %p955_p1, %p954_p0 }
   0xf   : > { %p937_p10 = pneg %p822_p9 }
  0x11   : > { %p949_p12 = pnand %p947_p11, %p937_p10 }
  0x13   : > { %p950_p13 = pneg %p949_p12 }
  0x15   : > { %p957_p3 = pnand %p956_p2, %p950_p13 }
  0x17   : > { %960 = shalt.err (!%p957_p3)
}
  0x18   : > { %s1054_s22 = smov 256   ;;  %s1055_s23 = smov 16  }
  0x19   : > { %824 = dma.hbm_to_vmem [thread:$0]  (!%p822_p9), %s1279_s1, 1024, %s104_s20, [#allocation3], %s1054_s22, %s1054_s22, %s1055_s23  }
  0x1a   : > { %136 = sbr.rel (%p1102_p7) target bundleno = 309 (0x135), region = 28 }
  0x1f   : > { %1006 = dma.done.wait (%p825_p6), [#allocation3], 1024  }
  0x20   : > { %1008 = vsyncadd (%p825_p6), [#allocation3], 4294966272  ;;  %s1120_s26 = sshll.u32 %s1085_s12, 3  ;;  %v1056_v0 = vmov 0   ;;  %v919_v1 = vld [vmem:[#allocation2 + $0x24] ss:$16 sps:$4 sm:$0xff]  }
  0x21   : > { %303 = vmatprep.mubr.bf16.mxu0 %v1056_v0  ;;  %376 = vmatprep.mubr.bf16.mxu1 %v1056_v0  ;;  %p166_p5 = scmp.lt.s32.totalorder %s1120_s26, 12  ;;  %v921_v2 = vld [vmem:[#allocation2 + $0x2c] ss:$16 sps:$4 sm:$0xff]   ;;  %v923_v3 = vld [vmem:[#allocation2 + $0x20] ss:$16 sps:$4 sm:$0xff]   ;;  %vm258_vm0 = vcmask 261120  }
  0x22   : > { %283 = vmatprep.subr.bf16.mxu0 %v919_v1  ;;  %v924_v4 = vld [vmem:[#allocation2 + $0x28] ss:$16 sps:$4 sm:$0xff]   ;;  %356 = vmatprep.subr.bf16.mxu1 %v921_v2  ;;  %v925_v5 = vld [vmem:[#allocation2 + $0x4] ss:$16 sps:$4 sm:$0xff]   ;;  %v927_v6 = vld [vmem:[#allocation2 + $0xc] ss:$16 sps:$4 sm:$0xff]  }
  0x23   : > { %s167_s27 = scalar_select %p166_p5, %s1120_s26, 12  ;;  %284 = vmatpush1.bf16.msra.mxu0 %v923_v3  ;;  %357 = vmatpush1.bf16.msra.mxu1 %v924_v4  ;;  %v929_v7 = vld [vmem:[#allocation2] ss:$16 sps:$4 sm:$0xff]   ;;  %v930_v8 = vld [vmem:[#allocation2 + $0x8] ss:$16 sps:$4 sm:$0xff]   ;;  %vm514_vm1 = vcmask 1043456  }
  0x24   : > { %285 = vmatprep.subr.bf16.mxu0 %v925_v5  ;;  %358 = vmatprep.subr.bf16.mxu1 %v927_v6  ;;  %s158_s4 = sand.u32 1, %s1011_s9   ;;  %vm515_vm2 = vcmask 130052   ;;  %s540_s7 = ssub.s32 (%p1097_p4), 13, %s1120_s26 }
  0x25   : > { %s740_s28 = sshll.u32 %s167_s27, 2  ;;  %s738_s5 = sshll.u32 %s158_s4, 7  ;;  %vm1136_vm3 = vmor %vm515_vm2, %vm514_vm1 }
  0x26   : > { %s169_s3 = scalar_lea.vmem %s1278_s0, %s740_s28  ;;  %s1140_s6 = scalar_lea.vmem [#allocation4], %s738_s5  }
  0x27   : > { %v931_v9 = vld [vmem:[%s169_s3] sm:$0xff]   ;;  %286 = vmatpush1.bf16.msra.mxu0 %v929_v7  ;;  %359 = vmatpush1.bf16.msra.mxu1 %v930_v8  ;;  %v932_v10 = vld [vmem:[%s169_s3 + $0x8] sm:$0xff]   ;;  %v933_v11 = vld [vmem:[%s169_s3 + $0x10] sm:$0xff]   ;;  %s814_s8 = sshll.u32 (%p1097_p4), %s1085_s12, 7  ;;  %p541_p6 = scmp.lt.s32.totalorder (%p1097_p4), %s540_s7, 8 }
  0x28   : > { %v934_v12 = vld [vmem:[%s169_s3 + $0x18] sm:$0xff]   ;;  %s1181_s14 = scalar_lea.vmem (%p1097_p4), %s1280_s2, %s814_s8  }
  0x2a   : > { %753 = vmatmul.mubr.msk.bf16.vlgmr.msra.gmra.mxu0 %vm258_vm0, %v931_v9  ;;  %757 = vmatmul.mubr.msk.bf16.vlgmr.msra.gmra.mxu1 %vm258_vm0, %v931_v9 }
  0x2b   : > { %313 = vmatprep.mubr.bf16.mxu0 %v1056_v0  ;;  %386 = vmatprep.mubr.bf16.mxu1 %v1056_v0 }
  0x32   : > { %754 = vmatmul.mubr.msk.bf16.gmra.mxu0 %vm258_vm0, %v932_v10  ;;  %758 = vmatmul.mubr.msk.bf16.gmra.mxu1 %vm258_vm0, %v932_v10 }
  0x33   : > { %323 = vmatprep.mubr.bf16.mxu0 %v1056_v0  ;;  %396 = vmatprep.mubr.bf16.mxu1 %v1056_v0 }
  0x3a   : > { %755 = vmatmul.mubr.msk.bf16.gmra.mxu0 %vm258_vm0, %v933_v11  ;;  %759 = vmatmul.mubr.msk.bf16.gmra.mxu1 %vm258_vm0, %v933_v11 }
  0x3b   : > { %333 = vmatprep.mubr.bf16.mxu0 %v1056_v0  ;;  %406 = vmatprep.mubr.bf16.mxu1 %v1056_v0 }
  0x42   : > { %756 = vmatmul.mubr.msk.bf16.gmra.mxu0 %vm258_vm0, %v934_v12  ;;  %760 = vmatmul.mubr.msk.bf16.gmra.mxu1 %vm258_vm0, %v934_v12 }
  0xea   : > { %v305_v13 = vpop.f32.mrf.mxu0  ;;  %v378_v14 = vpop.f32.mrf.mxu1 }
  0xec   : > { %v307_v15 = vpop.f32.mrf.mxu0  ;;  %v380_v16 = vpop.f32.mrf.mxu1 }
  0xed   : > { %v796_v18 = vpack.c.bf16 %v307_v15, %v305_v13  ;;  %v797_v19 = vpack.c.bf16 %v380_v16, %v378_v14 }
  0xee   : > { %v309_v20 = vpop.f32.mrf.mxu0  ;;  %v382_v21 = vpop.f32.mrf.mxu1 }
  0xef   : > { %513 = vst [vmem:[%s1140_s6] sm:$0xff] %v796_v18  ;;  %517 = vst.msk [vmem:[%s1140_s6 + $0x8] sm:$0xff] %vm1136_vm3, %v797_v19 }
  0xf0   : > { %v311_v22 = vpop.f32.mrf.mxu0  ;;  %v384_v23 = vpop.f32.mrf.mxu1 }
  0xf1   : > { %v798_v24 = vpack.c.bf16 %v311_v22, %v309_v20  ;;  %v799_v25 = vpack.c.bf16 %v384_v23, %v382_v21 }
  0xf2   : > { %v315_v26 = vpop.f32.mrf.mxu0  ;;  %v388_v27 = vpop.f32.mrf.mxu1 }
  0xf3   : > { %518 = vst [vmem:[%s1140_s6 + $0x10] sm:$0xff] %v798_v24  ;;  %519 = vst.msk [vmem:[%s1140_s6 + $0x18] sm:$0xff] %vm1136_vm3, %v799_v25 }
  0xf4   : > { %v317_v28 = vpop.f32.mrf.mxu0  ;;  %v390_v29 = vpop.f32.mrf.mxu1 }
  0xf5   : > { %v800_v30 = vpack.c.bf16 %v317_v28, %v315_v26  ;;  %v801_v31 = vpack.c.bf16 %v390_v29, %v388_v27 }
  0xf6   : > { %v319_v32 = vpop.f32.mrf.mxu0  ;;  %v392_v33 = vpop.f32.mrf.mxu1 }
  0xf7   : > { %520 = vst [vmem:[%s1140_s6 + $0x20] sm:$0xff] %v800_v30  ;;  %521 = vst.msk [vmem:[%s1140_s6 + $0x28] sm:$0xff] %vm1136_vm3, %v801_v31 }
  0xf8   : > { %v321_v34 = vpop.f32.mrf.mxu0  ;;  %v394_v35 = vpop.f32.mrf.mxu1 }
  0xf9   : > { %v802_v36 = vpack.c.bf16 %v321_v34, %v319_v32  ;;  %v803_v37 = vpack.c.bf16 %v394_v35, %v392_v33 }
  0xfa   : > { %v325_v38 = vpop.f32.mrf.mxu0  ;;  %v398_v39 = vpop.f32.mrf.mxu1 }
  0xfb   : > { %522 = vst [vmem:[%s1140_s6 + $0x30] sm:$0xff] %v802_v36  ;;  %523 = vst.msk [vmem:[%s1140_s6 + $0x38] sm:$0xff] %vm1136_vm3, %v803_v37 }
  0xfc   : > { %v327_v40 = vpop.f32.mrf.mxu0  ;;  %v400_v41 = vpop.f32.mrf.mxu1 }
  0xfd   : > { %v804_v42 = vpack.c.bf16 %v327_v40, %v325_v38  ;;  %v805_v43 = vpack.c.bf16 %v400_v41, %v398_v39 }
  0xfe   : > { %v329_v44 = vpop.f32.mrf.mxu0  ;;  %v402_v45 = vpop.f32.mrf.mxu1 }
  0xff   : > { %524 = vst [vmem:[%s1140_s6 + $0x40] sm:$0xff] %v804_v42  ;;  %525 = vst.msk [vmem:[%s1140_s6 + $0x48] sm:$0xff] %vm1136_vm3, %v805_v43 }
 0x100   : > { %v331_v46 = vpop.f32.mrf.mxu0  ;;  %v404_v47 = vpop.f32.mrf.mxu1 }
 0x101   : > { %v806_v48 = vpack.c.bf16 %v331_v46, %v329_v44  ;;  %v807_v49 = vpack.c.bf16 %v404_v47, %v402_v45 }
 0x102   : > { %v335_v50 = vpop.f32.mrf.mxu0  ;;  %v408_v51 = vpop.f32.mrf.mxu1 }
 0x103   : > { %526 = vst [vmem:[%s1140_s6 + $0x50] sm:$0xff] %v806_v48  ;;  %527 = vst.msk [vmem:[%s1140_s6 + $0x58] sm:$0xff] %vm1136_vm3, %v807_v49 }
 0x104   : > { %v337_v52 = vpop.f32.mrf.mxu0  ;;  %v410_v53 = vpop.f32.mrf.mxu1 }
 0x105   : > { %v808_v54 = vpack.c.bf16 %v337_v52, %v335_v50  ;;  %v809_v55 = vpack.c.bf16 %v410_v53, %v408_v51 }
 0x106   : > { %v339_v56 = vpop.f32.mrf.mxu0  ;;  %v412_v57 = vpop.f32.mrf.mxu1 }
 0x107   : > { %528 = vst [vmem:[%s1140_s6 + $0x60] sm:$0xff] %v808_v54  ;;  %529 = vst.msk [vmem:[%s1140_s6 + $0x68] sm:$0xff] %vm1136_vm3, %v809_v55  ;;  %538 = sbr.rel (!%p1097_p4) target bundleno = 309 (0x135), region = 36 }
 0x108   : > { %v341_v58 = vpop.f32.mrf.mxu0  ;;  %v414_v59 = vpop.f32.mrf.mxu1 }
 0x109   : > { %v810_v60 = vpack.c.bf16 %v341_v58, %v339_v56  ;;  %v811_v61 = vpack.c.bf16 %v414_v59, %v412_v57 }
 0x10b   : > { %530 = vst [vmem:[%s1140_s6 + $0x70] sm:$0xff] %v810_v60  ;;  %531 = vst.msk [vmem:[%s1140_s6 + $0x78] sm:$0xff] %vm1136_vm3, %v811_v61 }
 0x10c   : > { %s1292_s7 = smov (!%p541_p6, %s540_s7), 8 }
 0x10d   : > { %s812_s15 = sshll.u32 %s1292_s7, 8 }
 0x10e   : > { %p784_p7 = scmp.eq.s32.totalorder %s812_s15, 0 }
 0x10f   : > { %s1187_s18 = sshrl.u32 (!%p784_p7), %s1292_s7, 3 }
 0x110   : > { %551 = sbr.rel (%p784_p7) target bundleno = 309 (0x135), region = 40  ;;  %p785_p4 = scmp.le.s32.totalorder (!%p784_p7), %s1187_s18, 0 }
 0x115   : > { %679 = sbr.rel (%p785_p4) target bundleno = 292 (0x124), region = 89  ;;  %s1285_s12 = smov (!%p785_p4), %s1181_s14 }
 0x116   : > { %s1286_s17 = smov (!%p785_p4), %s1140_s6  ;;  %s1196_s19 = smov (!%p785_p4), 0  }
 0x117   : > { %s1198_s20 = smov (!%p785_p4), 0  }
 0x11a LB: >> { %v564_v62 = vld [vmem:[%s1027_s17] sm:$0xff]  ;;  %v566_v63 = vld [vmem:[%s1027_s17 + $0x10] sm:$0xff]  ;;  %s596_s21 = sadd.s32 1, %s1031_s19  ;;  %v580_v6 = vld [vmem:[%s1027_s17 + $0x8] sm:$0xff]  ;;  %s558_s20 = sadd.s32 1, %s1035_s20   ;;  %s1035_s20 = sphi %s1198_s20, %s558_s20   ;;  %s1031_s19 = sphi %s1196_s19, %s1287_s19   ;;  %s1027_s17 = sphi %s1286_s17, %s601_s17   ;;  %s1023_s12 = sphi %s1285_s12, %s602_s12  }
 0x11b   : >> { %v568_v0 = vld [vmem:[%s1027_s17 + $0x20] sm:$0xff]  ;;  %565 = vst [vmem:[%s1023_s12] sm:$0xff] %v564_v62  ;;  %567 = vst [vmem:[%s1023_s12 + $0x10] sm:$0xff] %v566_v63  ;;  %v570_v1 = vld [vmem:[%s1027_s17 + $0x30] sm:$0xff]  ;;  %p597_p8 = scmp.ge.s32.totalorder %s596_s21, %s1187_s18  ;;  %p557_p9 = scmp.ge.s32.totalorder %s558_s20, %s1187_s18 }
 0x11c   : >> { %569 = vst [vmem:[%s1023_s12 + $0x20] sm:$0xff] %v568_v0  ;;  %v572_v2 = vld [vmem:[%s1027_s17 + $0x40] sm:$0xff]  ;;  %v574_v3 = vld [vmem:[%s1027_s17 + $0x50] sm:$0xff]  ;;  %571 = vst [vmem:[%s1023_s12 + $0x30] sm:$0xff] %v570_v1 }
 0x11d   : >> { %573 = vst [vmem:[%s1023_s12 + $0x40] sm:$0xff] %v572_v2  ;;  %575 = vst [vmem:[%s1023_s12 + $0x50] sm:$0xff] %v574_v3  ;;  %v576_v4 = vld [vmem:[%s1027_s17 + $0x60] sm:$0xff]  ;;  %v578_v5 = vld [vmem:[%s1027_s17 + $0x70] sm:$0xff]  ;;  %s1294_s21 = smov (%p597_p8, %s596_s21), 0 }
 0x11e   : >> { %577 = vst [vmem:[%s1023_s12 + $0x60] sm:$0xff] %v576_v4  ;;  %579 = vst [vmem:[%s1023_s12 + $0x70] sm:$0xff] %v578_v5  ;;  %v582_v7 = vld [vmem:[%s1027_s17 + $0x18] sm:$0xff]  ;;  %v584_v8 = vld [vmem:[%s1027_s17 + $0x28] sm:$0xff]  ;;  %s786_s22 = sshll.u32 %s1294_s21, 7  ;;  %s1287_s19 = smov %s1294_s21 }
 0x11f   : >> { %581 = vst [vmem:[%s1023_s12 + $0x8] sm:$0xff] %v580_v6  ;;  %v586_v9 = vld [vmem:[%s1027_s17 + $0x38] sm:$0xff]  ;;  %583 = vst [vmem:[%s1023_s12 + $0x18] sm:$0xff] %v582_v7  ;;  %v588_v10 = vld [vmem:[%s1027_s17 + $0x48] sm:$0xff]  ;;  %560 = sbr.rel (!%p557_p9) target bundleno = 282 (0x11a), region = 95 }
 0x120   : >> { %585 = vst [vmem:[%s1023_s12 + $0x28] sm:$0xff] %v584_v8  ;;  %587 = vst [vmem:[%s1023_s12 + $0x38] sm:$0xff] %v586_v9  ;;  %v590_v11 = vld [vmem:[%s1027_s17 + $0x58] sm:$0xff]  ;;  %v592_v12 = vld [vmem:[%s1027_s17 + $0x68] sm:$0xff] }
 0x121   : >> { %589 = vst [vmem:[%s1023_s12 + $0x48] sm:$0xff] %v588_v10  ;;  %591 = vst [vmem:[%s1023_s12 + $0x58] sm:$0xff] %v590_v11  ;;  %v594_v13 = vld [vmem:[%s1027_s17 + $0x78] sm:$0xff]  ;;  %s601_s17 = scalar_lea.vmem %s1140_s6, %s786_s22 [#allocation4]  }
 0x122   : >> { %593 = vst [vmem:[%s1023_s12 + $0x68] sm:$0xff] %v592_v12  ;;  %595 = vst [vmem:[%s1023_s12 + $0x78] sm:$0xff] %v594_v13  ;;  %s602_s12 = scalar_lea.vmem %s1181_s14, %s786_s22  }
 0x124 PF: > { %s1256_s23 = sand.u32 7, %s1292_s7   ;;  %s815_s24 = sshll.u32 %s1187_s18, 7 }
 0x125   : > { %s1260_s25 = scalar_lea.vmem %s1140_s6, %s815_s24 [#allocation4]   ;;  %s609_s26 = scalar_lea.vmem %s1181_s14, %s815_s24  }
 0x126   : > { %p791_p10 = scmp.le.s32.totalorder %s1256_s23, 0 }
 0x127   : > { %s1037_s27 = smov (!%p791_p10), %s609_s26   ;;  %s1041_s28 = smov (!%p791_p10), %s1260_s25  }
 0x128   : > { %693 = sbr.rel (%p791_p10) target bundleno = 309 (0x135), region = 100  ;;  %s1045_s29 = smov (!%p791_p10), 0  }
 0x129   : > { %s1049_s30 = smov (!%p791_p10), 0  }
 0x12d LB: >> { %v619_v14 = vld [vmem:[%s1043_s28] sm:$0xff]  ;;  %v621_v15 = vld [vmem:[%s1043_s28 + $0x8] sm:$0xff]  ;;  %s623_s3 = sadd.s32 1, %s1047_s29  ;;  %s613_s30 = sadd.s32 1, %s1051_s30   ;;  %s1051_s30 = sphi %s1049_s30, %s613_s30   ;;  %s1047_s29 = sphi %s1045_s29, %s1046_s29   ;;  %s1043_s28 = sphi %s1041_s28, %s628_s28   ;;  %s1039_s27 = sphi %s1037_s27, %s629_s27  }
 0x12e   : >> { %620 = vst [vmem:[%s1039_s27] sm:$0xff] %v619_v14  ;;  %622 = vst [vmem:[%s1039_s27 + $0x8] sm:$0xff] %v621_v15  ;;  %p624_p11 = scmp.ge.s32.totalorder %s623_s3, %s1256_s23  ;;  %p612_p12 = scmp.ge.s32.totalorder %s613_s30, %s1256_s23 }
 0x130   : >> { %s1296_s3 = smov (%p624_p11, %s623_s3), 0  ;;  %615 = sbr.rel (!%p612_p12) target bundleno = 301 (0x12d), region = 106 }
 0x131   : >> { %s792_s4 = sshll.u32 %s1296_s3, 4  ;;  %s1046_s29 = smov %s1296_s3  }
 0x132   : >> { %s628_s28 = scalar_lea.vmem %s1260_s25, %s792_s4 [#allocation4]   ;;  %s629_s27 = scalar_lea.vmem %s609_s26, %s792_s4  }
 0x135 PF: > { %p10_p13 = scmp.ge.s32.totalorder %s1087_s13, 4   ;;  %s1288_s9 = smov %s1015_s10 }
 0x136   : > { %s1289_s10 = smov %s1095_s16  ;;  %s1290_s11 = smov %s1087_s13 }
 0x137   :  { %12 = sbr.rel (!%p10_p13) target bundleno = 2 (0x2), region = 117 }
 0x13c   :  { %645 = vsyncpa [#allocation3], 1 }
 0x13d   :  { %647 = vsyncpa [#allocation3 + $0x1], 1 }

// kernel: conv_decoder_forward.4
= control target key start
LH: loop header
LB: loop body
LE: loop exit
PB: predicated region body
PF: predicated region fallthrough
CT: control target
= control target key end

     0   :  { %10 = vsyncpa [#allocation3], 0  ;;  %s2058_s0 = inlined_call_operand.vmem [shape: bf16[4,32], index: 0, kind: input, shape index: {}]   ;;  %s2059_s1 = inlined_call_operand.hbm [shape: bf16[32,256], index: 1, kind: input, shape index: {}]   ;;  %s2060_s2 = inlined_call_operand.hbm [shape: f32[1,256], index: 2, kind: input, shape index: {}]   ;;  %s2061_s3 = inlined_call_operand.vmem [shape: bf16[256,800], index: 3, kind: input, shape index: {}]   ;;  %s2062_s4 = inlined_call_operand.hbm [shape: f32[1,800], index: 4, kind: input, shape index: {}]   ;;  %s2063_s5 = inlined_call_operand.vmem [shape: bf16[4,800], index: 5, kind: output, shape index: {}]  }
   0x1   :  { %11 = vsyncpa [#allocation5], 0  ;;  %s1626_s18 = smov [#allocation4]   ;;  %s1627_s20 = smov [#allocation2]  }
   0x2   :  { %s32_s19 = sshll.u32 %s1626_s18, 4  ;;  %s19_s21 = sshll.u32 %s1627_s20, 4  ;;  %s33_s19 = int_to_ptr.vmem [resolvable:$true] %s32_s19  ;;  %s20_s21 = int_to_ptr.vmem [resolvable:$true] %s19_s21 }
   0x3   :  { %s1570_s22 = scalar_lea.vmem %s33_s19, 32  ;;  %p1575_p1 = scmp.lt.s32.totalorder %s33_s19, %s33_s19 }
   0x4   :  { %p1571_p0 = scmp.ne.s32.totalorder %s33_s19, %s1570_s22  ;;  %p1576_p2 = scmp.lt.s32.totalorder %s1570_s22, %s1570_s22 }
   0x6   :  { %p1577_p3 = por %p1576_p2, %p1575_p1 }
   0x8   :  { %p1578_p4 = pnand %p1577_p3, %p1571_p0 }
   0xa   :  { %1581 = shalt.err (!%p1578_p4)
}
   0xb   :  { %35 = dma.hbm_to_vmem [thread:$0]  %s2060_s2, 32, %s33_s19, [#allocation5]  }
   0xc   :  { %s1590_s25 = scalar_lea.vmem %s20_s21, 512  ;;  %p1595_p6 = scmp.lt.s32.totalorder %s20_s21, %s20_s21 }
   0xd   :  { %p1591_p5 = scmp.ne.s32.totalorder %s20_s21, %s1590_s25  ;;  %p1596_p7 = scmp.lt.s32.totalorder %s1590_s25, %s1590_s25 }
   0xf   :  { %p1597_p8 = por %p1596_p7, %p1595_p6 }
  0x11   :  { %p1598_p9 = pnand %p1597_p8, %p1591_p5 }
  0x13   :  { %1601 = shalt.err (!%p1598_p9)
}
  0x14   :  { %s1628_s26 = smov 128   ;;  %s1629_s27 = smov 8  }
  0x15   :  { %25 = dma.hbm_to_vmem [thread:$0]  %s2059_s1, 512, %s20_s21, [#allocation3], %s1628_s26, %s1628_s26, %s1629_s27  }
  0x16   :  { %s1630_s30 = smov [#allocation6]  }
  0x17   :  { %s44_s6 = sshll.u32 %s1630_s30, 4  ;;  %s45_s6 = int_to_ptr.vmem [resolvable:$true] %s44_s6 }
  0x18   :  { %s1610_s7 = scalar_lea.vmem %s45_s6, 112  ;;  %s1614_s8 = scalar_lea.vmem %s45_s6, 128 }
  0x19   :  { %p1611_p10 = scmp.ne.s32.totalorder %s45_s6, %s1610_s7  ;;  %p1615_p11 = scmp.lt.s32.totalorder %s45_s6, %s45_s6 }
  0x1a   :  { %p1616_p12 = scmp.lt.s32.totalorder %s1614_s8, %s1610_s7 }
  0x1c   :  { %p1617_p13 = por %p1616_p12, %p1615_p11 }
  0x1e   :  { %p1618_p0 = pnand %p1617_p13, %p1611_p10 }
  0x20   :  { %1621 = shalt.err (!%p1618_p0)
}
  0x21   :  { %47 = dma.hbm_to_vmem [thread:$0]  %s2062_s4, 112, %s45_s6, [#allocation5]  }
  0x22   :  { %1622 = dma.done.wait [#allocation3], 512  }
  0x23   :  { %1623 = vsyncadd [#allocation3], 4294966784 }
  0x24   :  { %1624 = dma.done.wait [#allocation5], 144  }
  0x25   :  { %1625 = vsyncadd [#allocation5], 4294967152  ;;  %v1631_v0 = vmov 0   ;;  %v68_v1 = vlaneseq  ;;  %v1632_v2 = vmov 1983009808   ;;  %vm119_vm0 = vcmask 261120  }
  0x26   :  { %155 = vmatprep.mubr.bf16.mxu0 %v1631_v0  ;;  %v85_v3 = vunpack.c.l.s4 %v1632_v2  ;;  %v1396_v6 = vld [vmem:[#allocation2 + $0x14] ss:$8 sps:$4 sm:$0xff]   ;;  %v1398_v7 = vld [vmem:[#allocation2 + $0x10] ss:$8 sps:$4 sm:$0xff]   ;;  %v1399_v8 = vld [vmem:[#allocation2 + $0x4] ss:$8 sps:$4 sm:$0xff]  }
  0x27   :  { %v1672_v4 = vshrl.u32 %v68_v1, 7  ;;  %135 = vmatprep.subr.bf16.mxu0 %v1396_v6  ;;  %v1401_v9 = vld [vmem:[#allocation2] ss:$8 sps:$4 sm:$0xff]   ;;  %v60_v13 = vld [vmem:[%s2058_s0 + $0x4] sm:$0x3]  ;;  %vm1187_vm1 = vcmask 1041408  }
  0x28   :  { %v86_v5 = vunpack.c.0.s8 %v85_v3  ;;  %v58_v10 = vld [vmem:[%s2058_s0] sm:$0x3]  ;;  %136 = vmatpush1.bf16.msra.mxu0 %v1398_v7  ;;  %v59_v12 = vld [vmem:[%s2058_s0 + $0x2] sm:$0x3]  ;;  %v61_v14 = vld [vmem:[%s2058_s0 + $0x6] sm:$0x3] }
  0x29   :  { %137 = vmatprep.subr.bf16.mxu0 %v1399_v8  ;;  %v82_v15 = vcombine.low %v58_v10, %v59_v12  ;;  %v83_v16 = vcombine.low %v60_v13, %v61_v14  ;;  %v1402_v17 = vld [vmem:[%s2061_s3 + $0x18c] ss:$28 sps:$4 sm:$0xff]   ;;  %v1406_v21 = vld [vmem:[%s2061_s3 + $0x194] ss:$28 sps:$4 sm:$0xff]   ;;  %v1412_v25 = vld [vmem:[%s2061_s3 + $0x15c] ss:$28 sps:$4 sm:$0xff]  }
  0x2a   :  { %v1678_v11 = vsub.s32 %v86_v5, %v1672_v4  ;;  %v1404_v18 = vld [vmem:[%s2061_s3 + $0x190] ss:$28 sps:$4 sm:$0xff]   ;;  %909 = vmatprep.subr.bf16.mxu1 %v1402_v17  ;;  %v1407_v22 = vld [vmem:[%s2061_s3 + $0x188] ss:$28 sps:$4 sm:$0xff]   ;;  %v1414_v27 = vld [vmem:[%s2061_s3 + $0x11c] ss:$28 sps:$4 sm:$0xff]  }
  0x2b   :  { %v1408_v23 = vld [vmem:[%s2061_s3 + $0x154] ss:$28 sps:$4 sm:$0xff]   ;;  %910 = vmatpush1.bf16.msra.mxu1 %v1407_v22  ;;  %v1418_v29 = vld [vmem:[%s2061_s3 + $0x124] ss:$28 sps:$4 sm:$0xff]   ;;  %v1424_v33 = vld [vmem:[%s2061_s3 + $0xec] ss:$28 sps:$4 sm:$0xff]  }
  0x2c   :  { %v90_v19 = vrot.slane %v82_v15, %v1678_v11  ;;  %v97_v20 = vrot.slane %v83_v16, %v1678_v11  ;;  %138 = vmatpush1.bf16.msra.mxu0 %v1401_v9  ;;  %911 = vmatprep.subr.bf16.mxu1 %v1408_v23  ;;  %v1413_v26 = vld [vmem:[%s2061_s3 + $0x150] ss:$28 sps:$4 sm:$0xff]   ;;  %v1410_v28 = vld [vmem:[%s2061_s3 + $0x158] ss:$28 sps:$4 sm:$0xff]   ;;  %v1420_v31 = vld [vmem:[%s2061_s3 + $0xe4] ss:$28 sps:$4 sm:$0xff]  }
  0x2d   :  { %952 = vmatprep.subr.bf16.mxu0 %v1406_v21  ;;  %v1419_v30 = vld [vmem:[%s2061_s3 + $0x118] ss:$28 sps:$4 sm:$0xff]   ;;  %v1416_v32 = vld [vmem:[%s2061_s3 + $0x120] ss:$28 sps:$4 sm:$0xff]   ;;  %v1426_v35 = vld [vmem:[%s2061_s3 + $0xac] ss:$28 sps:$4 sm:$0xff]  }
  0x2e   :  { %v98_v24 = vcombine.low %v90_v19, %v97_v20  ;;  %v1425_v34 = vld [vmem:[%s2061_s3 + $0xe0] ss:$28 sps:$4 sm:$0xff]   ;;  %v1422_v36 = vld [vmem:[%s2061_s3 + $0xe8] ss:$28 sps:$4 sm:$0xff]   ;;  %v1430_v37 = vld [vmem:[%s2061_s3 + $0xb4] ss:$28 sps:$4 sm:$0xff]  }
  0x2f   :  { %912 = vmatpush1.bf16.msra.mxu1 %v1413_v26  ;;  %v1431_v38 = vld [vmem:[%s2061_s3 + $0xa8] ss:$28 sps:$4 sm:$0xff]   ;;  %v1432_v39 = vld [vmem:[%s2061_s3 + $0x74] ss:$28 sps:$4 sm:$0xff]   ;;  %v1436_v41 = vld [vmem:[%s2061_s3 + $0x7c] ss:$28 sps:$4 sm:$0xff]  }
  0x30   :  { %1246 = vmatmul.mubr.msk.bf16.vlgmr.msra.gmra.mxu0 %vm119_vm0, %v98_v24  ;;  %913 = vmatprep.subr.bf16.mxu1 %v1414_v27  ;;  %v1428_v40 = vld [vmem:[%s2061_s3 + $0xb0] ss:$28 sps:$4 sm:$0xff]   ;;  %v1438_v43 = vld [vmem:[%s2061_s3 + $0x3c] ss:$28 sps:$4 sm:$0xff]   ;;  %v1442_v45 = vld [vmem:[%s2061_s3 + $0x44] ss:$28 sps:$4 sm:$0xff]  }
  0x31   :  { %953 = vmatpush1.bf16.msra.mxu0 %v1404_v18  ;;  %v1437_v42 = vld [vmem:[%s2061_s3 + $0x70] ss:$28 sps:$4 sm:$0xff]   ;;  %v1434_v44 = vld [vmem:[%s2061_s3 + $0x78] ss:$28 sps:$4 sm:$0xff]   ;;  %v1444_v47 = vld [vmem:[%s2061_s3 + $0x4] ss:$28 sps:$4 sm:$0xff]  }
  0x32   :  { %954 = vmatprep.subr.bf16.mxu0 %v1412_v25  ;;  %v1443_v46 = vld [vmem:[%s2061_s3 + $0x38] ss:$28 sps:$4 sm:$0xff]   ;;  %v1440_v48 = vld [vmem:[%s2061_s3 + $0x40] ss:$28 sps:$4 sm:$0xff]   ;;  %v1448_v49 = vld [vmem:[%s2061_s3 + $0xc] ss:$28 sps:$4 sm:$0xff]  }
  0x33   :  { %914 = vmatpush1.bf16.msra.mxu1 %v1419_v30  ;;  %v1449_v50 = vld [vmem:[%s2061_s3] ss:$28 sps:$4 sm:$0xff]   ;;  %v1450_v51 = vld [vmem:[%s2061_s3 + $0x34c] ss:$28 sps:$4 sm:$0xff]   ;;  %v1454_v53 = vld [vmem:[%s2061_s3 + $0x354] ss:$28 sps:$4 sm:$0xff]  }
  0x34   :  { %915 = vmatprep.subr.bf16.mxu1 %v1420_v31  ;;  %v1446_v52 = vld [vmem:[%s2061_s3 + $0x8] ss:$28 sps:$4 sm:$0xff]   ;;  %v1456_v55 = vld [vmem:[%s2061_s3 + $0x314] ss:$28 sps:$4 sm:$0xff]   ;;  %v1460_v57 = vld [vmem:[%s2061_s3 + $0x31c] ss:$28 sps:$4 sm:$0xff]  }
  0x35   :  { %955 = vmatpush1.bf16.msra.mxu0 %v1410_v28  ;;  %v1455_v54 = vld [vmem:[%s2061_s3 + $0x348] ss:$28 sps:$4 sm:$0xff]   ;;  %v1452_v56 = vld [vmem:[%s2061_s3 + $0x350] ss:$28 sps:$4 sm:$0xff]   ;;  %v1458_v59 = vld [vmem:[%s2061_s3 + $0x318] ss:$28 sps:$4 sm:$0xff]  }
  0x36   :  { %956 = vmatprep.subr.bf16.mxu0 %v1418_v29  ;;  %v1461_v58 = vld [vmem:[%s2061_s3 + $0x310] ss:$28 sps:$4 sm:$0xff]   ;;  %v1462_v60 = vld [vmem:[%s2061_s3 + $0x2dc] ss:$28 sps:$4 sm:$0xff]   ;;  %v1466_v61 = vld [vmem:[%s2061_s3 + $0x2e4] ss:$28 sps:$4 sm:$0xff]  }
  0x37   :  { %916 = vmatpush1.bf16.msra.mxu1 %v1425_v34  ;;  %v1467_v62 = vld [vmem:[%s2061_s3 + $0x2d8] ss:$28 sps:$4 sm:$0xff]   ;;  %v1468_v63 = vld [vmem:[%s2061_s3 + $0x2a4] ss:$28 sps:$4 sm:$0xff]   ;;  %v1472_v1 = vld [vmem:[%s2061_s3 + $0x2ac] ss:$28 sps:$4 sm:$0xff]  }
  0x38   :  { %917 = vmatprep.subr.bf16.mxu1 %v1426_v35  ;;  %v1464_v0 = vld [vmem:[%s2061_s3 + $0x2e0] ss:$28 sps:$4 sm:$0xff]   ;;  %v1474_v3 = vld [vmem:[%s2061_s3 + $0x26c] ss:$28 sps:$4 sm:$0xff]   ;;  %v1478_v6 = vld [vmem:[%s2061_s3 + $0x274] ss:$28 sps:$4 sm:$0xff]  }
  0x39   :  { %957 = vmatpush1.bf16.msra.mxu0 %v1416_v32  ;;  %v1473_v2 = vld [vmem:[%s2061_s3 + $0x2a0] ss:$28 sps:$4 sm:$0xff]   ;;  %v1470_v5 = vld [vmem:[%s2061_s3 + $0x2a8] ss:$28 sps:$4 sm:$0xff]   ;;  %v1480_v8 = vld [vmem:[%s2061_s3 + $0x234] ss:$28 sps:$4 sm:$0xff]  }
  0x3a   :  { %958 = vmatprep.subr.bf16.mxu0 %v1424_v33  ;;  %v1479_v7 = vld [vmem:[%s2061_s3 + $0x268] ss:$28 sps:$4 sm:$0xff]   ;;  %v1476_v9 = vld [vmem:[%s2061_s3 + $0x270] ss:$28 sps:$4 sm:$0xff]   ;;  %v1484_v10 = vld [vmem:[%s2061_s3 + $0x23c] ss:$28 sps:$4 sm:$0xff]  }
  0x3b   :  { %918 = vmatpush1.bf16.msra.mxu1 %v1431_v38  ;;  %v1482_v12 = vld [vmem:[%s2061_s3 + $0x238] ss:$28 sps:$4 sm:$0xff]   ;;  %v1485_v13 = vld [vmem:[%s2061_s3 + $0x230] ss:$28 sps:$4 sm:$0xff]   ;;  %v1490_v15 = vld [vmem:[%s2061_s3 + $0x204] ss:$28 sps:$4 sm:$0xff]  }
  0x3c   :  { %919 = vmatprep.subr.bf16.mxu1 %v1432_v39  ;;  %v1486_v14 = vld [vmem:[%s2061_s3 + $0x1fc] ss:$28 sps:$4 sm:$0xff]   ;;  %v1492_v18 = vld [vmem:[%s2061_s3 + $0x1c4] ss:$28 sps:$4 sm:$0xff]   ;;  %v1496_v19 = vld [vmem:[%s2061_s3 + $0x1cc] ss:$28 sps:$4 sm:$0xff]  }
  0x3d   :  { %959 = vmatpush1.bf16.msra.mxu0 %v1422_v36  ;;  %v1488_v16 = vld [vmem:[%s2061_s3 + $0x200] ss:$28 sps:$4 sm:$0xff]   ;;  %v1491_v17 = vld [vmem:[%s2061_s3 + $0x1f8] ss:$28 sps:$4 sm:$0xff]   ;;  %v1494_v20 = vld [vmem:[%s2061_s3 + $0x1c8] ss:$28 sps:$4 sm:$0xff]  }
  0x3e   :  { %960 = vmatprep.subr.bf16.mxu0 %v1430_v37  ;;  %v1497_v21 = vld [vmem:[%s2061_s3 + $0x1c0] ss:$28 sps:$4 sm:$0xff]   ;;  %v74_v24 = vsub.s32 1, %v1672_v4  ;;  %v70_v25 = vsub.s32 0, %v1672_v4  ;;  %v1498_v38 = vld [vmem:[%s2061_s3 + $0x198] ss:$28 sps:$4 sm:$0xff]  }
  0x3f   :  { %920 = vmatpush1.bf16.msra.mxu1 %v1437_v42  ;;  %v1500_v22 = vld [vmem:[%s2061_s3 + $0x19c] ss:$28 sps:$4 sm:$0xff]   ;;  %v66_v27 = vld [vmem:[#allocation4] sm:$0x3]  ;;  %v1506_v42 = vld [vmem:[%s2061_s3 + $0x328] ss:$28 sps:$4 sm:$0xff]  }
  0x40   :  { %921 = vmatprep.subr.bf16.mxu1 %v1438_v43  ;;  %v1501_v23 = vld [vmem:[%s2061_s3 + $0x360] ss:$28 sps:$4 sm:$0xff]   ;;  %v75_v29 = vrot.slane %v66_v27, %v74_v24  ;;  %v71_v30 = vrot.slane %v66_v27, %v70_v25  ;;  %v312_v27 = vsub.s32 3, %v1672_v4  ;;  %vm1188_vm2 = vcmask 1043458  }
  0x41   :  { %961 = vmatpush1.bf16.msra.mxu0 %v1428_v40  ;;  %v1502_v39 = vld [vmem:[%s2061_s3 + $0x1a0] ss:$28 sps:$4 sm:$0xff]   ;;  %vm1189_vm3 = vmor %vm1188_vm2, %vm1187_vm1  ;;  %vm1190_vm4 = vcmask 259076  }
  0x42   :  { %962 = vmatprep.subr.bf16.mxu0 %v1436_v41  ;;  %v1505_v41 = vld [vmem:[%s2061_s3 + $0x164] ss:$28 sps:$4 sm:$0xff]   ;;  %vm1191_vm5 = vmor %vm1190_vm4, %vm1189_vm3 }
  0x43   :  { %922 = vmatpush1.bf16.msra.mxu1 %v1443_v46  ;;  %v1503_v43 = vld [vmem:[%s2061_s3 + $0x160] ss:$28 sps:$4 sm:$0xff]   ;;  %v1511_v46 = vld [vmem:[%s2061_s3 + $0x2f0] ss:$28 sps:$4 sm:$0xff]  }
  0x44   :  { %923 = vmatprep.subr.bf16.mxu1 %v1444_v47  ;;  %v1508_v47 = vld [vmem:[%s2061_s3 + $0x128] ss:$28 sps:$4 sm:$0xff]  }
  0x45   :  { %963 = vmatpush1.bf16.msra.mxu0 %v1434_v44  ;;  %v1507_v44 = vld [vmem:[%s2061_s3 + $0x168] ss:$28 sps:$4 sm:$0xff]  }
  0x46   :  { %964 = vmatprep.subr.bf16.mxu0 %v1442_v45  ;;  %v1510_v45 = vld [vmem:[%s2061_s3 + $0x12c] ss:$28 sps:$4 sm:$0xff]  }
  0x47   :  { %924 = vmatpush1.bf16.msra.mxu1 %v1449_v50  ;;  %v1516_v50 = vld [vmem:[%s2061_s3 + $0x2b8] ss:$28 sps:$4 sm:$0xff]  }
  0x48   :  { %925 = vmatprep.subr.bf16.mxu1 %v1450_v51  ;;  %v1513_v51 = vld [vmem:[%s2061_s3 + $0xf0] ss:$28 sps:$4 sm:$0xff]  }
  0x49   :  { %965 = vmatpush1.bf16.msra.mxu0 %v1440_v48  ;;  %v1512_v48 = vld [vmem:[%s2061_s3 + $0x130] ss:$28 sps:$4 sm:$0xff]  }
  0x4a   :  { %966 = vmatprep.subr.bf16.mxu0 %v1448_v49  ;;  %v1515_v49 = vld [vmem:[%s2061_s3 + $0xf4] ss:$28 sps:$4 sm:$0xff]  }
  0x4b   :  { %926 = vmatpush2.bf16.msra.mxu1 %v1455_v54  ;;  %v1521_v54 = vld [vmem:[%s2061_s3 + $0x280] ss:$28 sps:$4 sm:$0xff]  }
  0x4c   :  { %927 = vmatprep.subr.bf16.mxu1 %v1456_v55  ;;  %v1518_v55 = vld [vmem:[%s2061_s3 + $0xb8] ss:$28 sps:$4 sm:$0xff]  }
  0x4d   :  { %967 = vmatpush1.bf16.msra.mxu0 %v1446_v52  ;;  %v1517_v52 = vld [vmem:[%s2061_s3 + $0xf8] ss:$28 sps:$4 sm:$0xff]  }
  0x4e   :  { %968 = vmatprep.subr.bf16.mxu0 %v1454_v53  ;;  %v1520_v53 = vld [vmem:[%s2061_s3 + $0xbc] ss:$28 sps:$4 sm:$0xff]  }
  0x4f   :  { %928 = vmatpush2.bf16.msra.mxu1 %v1461_v58  ;;  %v1526_v58 = vld [vmem:[%s2061_s3 + $0x248] ss:$28 sps:$4 sm:$0xff]  }
  0x50   :  { %929 = vmatprep.subr.bf16.mxu1 %v1462_v60  ;;  %v1527_v60 = vld [vmem:[%s2061_s3 + $0x88] ss:$28 sps:$4 sm:$0xff]  }
  0x51   :  { %969 = vmatpush2.bf16.msra.mxu0 %v1452_v56  ;;  %v1522_v56 = vld [vmem:[%s2061_s3 + $0xc0] ss:$28 sps:$4 sm:$0xff]  }
  0x52   :  { %970 = vmatprep.subr.bf16.mxu0 %v1460_v57  ;;  %v1525_v57 = vld [vmem:[%s2061_s3 + $0x84] ss:$28 sps:$4 sm:$0xff]  }
  0x53   :  { %930 = vmatpush2.bf16.msra.mxu1 %v1467_v62  ;;  %v1531_v62 = vld [vmem:[%s2061_s3 + $0x210] ss:$28 sps:$4 sm:$0xff]  }
  0x54   :  { %931 = vmatprep.subr.bf16.mxu1 %v1468_v63  ;;  %v1528_v63 = vld [vmem:[%s2061_s3 + $0x48] ss:$28 sps:$4 sm:$0xff]  }
  0x55   :  { %971 = vmatpush2.bf16.msra.mxu0 %v1458_v59  ;;  %v1523_v59 = vld [vmem:[%s2061_s3 + $0x80] ss:$28 sps:$4 sm:$0xff]  }
  0x56   :  { %972 = vmatprep.subr.bf16.mxu0 %v1466_v61  ;;  %v1530_v61 = vld [vmem:[%s2061_s3 + $0x4c] ss:$28 sps:$4 sm:$0xff]  }
  0x57   :  { %932 = vmatpush2.bf16.msra.mxu1 %v1473_v2  ;;  %v1536_v2 = vld [vmem:[%s2061_s3 + $0x1d8] ss:$28 sps:$4 sm:$0xff]  }
  0x58   :  { %933 = vmatprep.subr.bf16.mxu1 %v1474_v3  ;;  %v1533_v3 = vld [vmem:[%s2061_s3 + $0x10] ss:$28 sps:$4 sm:$0xff]  }
  0x59   :  { %973 = vmatpush2.bf16.msra.mxu0 %v1464_v0  ;;  %v1532_v0 = vld [vmem:[%s2061_s3 + $0x50] ss:$28 sps:$4 sm:$0xff]  }
  0x5a   :  { %974 = vmatprep.subr.bf16.mxu0 %v1472_v1  ;;  %v1535_v1 = vld [vmem:[%s2061_s3 + $0x14] ss:$28 sps:$4 sm:$0xff]  }
  0x5b   :  { %934 = vmatpush2.bf16.msra.mxu1 %v1479_v7  ;;  %v1538_v7 = vld [vmem:[%s2061_s3 + $0x358] ss:$28 sps:$4 sm:$0xff]  }
  0x5c   :  { %935 = vmatprep.subr.bf16.mxu1 %v1480_v8  ;;  %v1543_v8 = vld [vmem:[%s2061_s3 + $0x324] ss:$28 sps:$4 sm:$0xff]  }
  0x5d   :  { %975 = vmatpush2.bf16.msra.mxu0 %v1470_v5  ;;  %v1537_v5 = vld [vmem:[%s2061_s3 + $0x18] ss:$28 sps:$4 sm:$0xff]  }
  0x5e   :  { %976 = vmatprep.subr.bf16.mxu0 %v1478_v6  ;;  %v1540_v6 = vld [vmem:[%s2061_s3 + $0x35c] ss:$28 sps:$4 sm:$0xff]  }
  0x5f   :  { %936 = vmatpush2.bf16.msra.mxu1 %v1485_v13  ;;  %v1549_v13 = vld [vmem:[%s2061_s3 + $0x2b4] ss:$28 sps:$4 sm:$0xff]  }
  0x60   :  { %937 = vmatprep.subr.bf16.mxu1 %v1486_v14  ;;  %v1547_v14 = vld [vmem:[%s2061_s3 + $0x2b0] ss:$28 sps:$4 sm:$0xff]  }
  0x61   :  { %977 = vmatpush2.bf16.msra.mxu0 %v1476_v9  ;;  %v1541_v9 = vld [vmem:[%s2061_s3 + $0x320] ss:$28 sps:$4 sm:$0xff]  }
  0x62   :  { %978 = vmatprep.subr.bf16.mxu0 %v1484_v10  ;;  %v1546_v10 = vld [vmem:[%s2061_s3 + $0x2ec] ss:$28 sps:$4 sm:$0xff]  }
  0x63   :  { %938 = vmatpush2.bf16.msra.mxu1 %v1491_v17  ;;  %v1555_v17 = vld [vmem:[%s2061_s3 + $0x244] ss:$28 sps:$4 sm:$0xff]  }
  0x64   :  { %939 = vmatprep.subr.bf16.mxu1 %v1492_v18  ;;  %v1553_v18 = vld [vmem:[%s2061_s3 + $0x240] ss:$28 sps:$4 sm:$0xff]  }
  0x65   :  { %979 = vmatpush2.bf16.msra.mxu0 %v1482_v12  ;;  %v1544_v12 = vld [vmem:[%s2061_s3 + $0x2e8] ss:$28 sps:$4 sm:$0xff]  }
  0x66   :  { %980 = vmatprep.subr.bf16.mxu0 %v1490_v15  ;;  %v1552_v15 = vld [vmem:[%s2061_s3 + $0x27c] ss:$28 sps:$4 sm:$0xff]  }
  0x67   :  { %940 = vmatpush2.bf16.msra.mxu1 %v1497_v21  ;;  %v1561_v21 = vld [vmem:[%s2061_s3 + $0x1d4] ss:$28 sps:$4 sm:$0xff]  }
  0x68   :  { %995 = vmatprep.subr.bf16.mxu1 %v1500_v22  ;;  %v1559_v22 = vld [vmem:[%s2061_s3 + $0x1d0] ss:$28 sps:$4 sm:$0xff]  }
  0x69   :  { %981 = vmatpush2.bf16.msra.mxu0 %v1488_v16  ;;  %v1550_v16 = vld [vmem:[%s2061_s3 + $0x278] ss:$28 sps:$4 sm:$0xff]  }
  0x6a   :  { %982 = vmatprep.subr.bf16.mxu0 %v1496_v19  ;;  %v1558_v19 = vld [vmem:[%s2061_s3 + $0x20c] ss:$28 sps:$4 sm:$0xff]  }
  0x6d   :  { %983 = vmatpush2.bf16.msra.mxu0 %v1494_v20  ;;  %v1556_v20 = vld [vmem:[%s2061_s3 + $0x208] ss:$28 sps:$4 sm:$0xff]  }
  0x6e   :  { %1367 = vmatprep.subr.bf16.mxu0 %v1501_v23  ;;  %v308_v23 = vsub.s32 2, %v1672_v4 }
  0xf0   :  { %v157_v26 = vpop.f32.mrf.mxu0 }
  0xf1   :  { %v158_v36 = vadd.f32 %v157_v26, %v71_v30  ;;  %v296_v26 = vld [vmem:[#allocation6] sm:$0x7f] }
  0xf2   :  { %v159_v28 = vpop.f32.mrf.mxu0 }
  0xf3   :  { %v160_v34 = vadd.f32 %v159_v28, %v75_v29  ;;  %v301_v28 = vrot.slane %v296_v26, %v70_v25 }
  0xf4   :  { %v161_v31 = vpop.f32.mrf.mxu0 }
  0xf5   :  { %v162_v32 = vadd.f32 %v161_v31, %v71_v30  ;;  %v305_v30 = vrot.slane %v296_v26, %v74_v24  ;;  %v313_v31 = vrot.slane %v296_v26, %v312_v27 }
  0xf6   :  { %v163_v33 = vpop.f32.mrf.mxu0 }
  0xf7   :  { %v164_v35 = vadd.f32 %v163_v33, %v75_v29  ;;  %v1901_v40 = vpack.c.bf16 %v162_v32, %v158_v36  ;;  %v309_v29 = vrot.slane %v296_v26, %v308_v23 }
  0xf9   :  { %v167_v37 = vpack.c.bf16 %v164_v35, %v160_v34 }
  0xfb   :  { %941 = vmatprep.mubr.bf16.mxu1 %v167_v37  ;;  %984 = vmatprep.mubr.bf16.mxu0 %v167_v37 }
  0xfc   :  { %942 = vmatmul.mubr.bf16.vlgmr.msra.gmra.mxu1 %v1901_v40  ;;  %985 = vmatmul.mubr.bf16.vlgmr.msra.gmra.mxu0 %v1901_v40 }
  0xfd   :  { %996 = vmatpush1.bf16.msra.mxu1 %v1498_v38  ;;  %1368 = vmatpush3.bf16.msra.mxu0 %v1502_v39 }
  0xfe   :  { %1027 = vmatprep.mubr.bf16.mxu1 %v167_v37  ;;  %1070 = vmatprep.mubr.bf16.mxu0 %v167_v37 }
  0xff   :  { %997 = vmatprep.subr.bf16.mxu1 %v1505_v41  ;;  %1369 = vmatprep.subr.bf16.mxu0 %v1506_v42 }
 0x101   :  { %998 = vmatpush1.bf16.msra.mxu1 %v1503_v43  ;;  %1370 = vmatpush3.bf16.msra.mxu0 %v1507_v44 }
 0x102   :  { %999 = vmatprep.subr.bf16.mxu1 %v1510_v45  ;;  %1371 = vmatprep.subr.bf16.mxu0 %v1511_v46 }
 0x105   :  { %1000 = vmatpush1.bf16.msra.mxu1 %v1508_v47  ;;  %1372 = vmatpush3.bf16.msra.mxu0 %v1512_v48 }
 0x106   :  { %1001 = vmatprep.subr.bf16.mxu1 %v1515_v49  ;;  %1373 = vmatprep.subr.bf16.mxu0 %v1516_v50 }
 0x109   :  { %1002 = vmatpush1.bf16.msra.mxu1 %v1513_v51  ;;  %1374 = vmatpush3.bf16.msra.mxu0 %v1517_v52 }
 0x10a   :  { %1003 = vmatprep.subr.bf16.mxu1 %v1520_v53  ;;  %1375 = vmatprep.subr.bf16.mxu0 %v1521_v54 }
 0x10d   :  { %1004 = vmatpush1.bf16.msra.mxu1 %v1518_v55  ;;  %1376 = vmatpush3.bf16.msra.mxu0 %v1522_v56  ;;  %v324_v55 = vsub.s32 6, %v1672_v4 }
 0x10e   :  { %1005 = vmatprep.subr.bf16.mxu1 %v1525_v57  ;;  %1377 = vmatprep.subr.bf16.mxu0 %v1526_v58  ;;  %v316_v57 = vsub.s32 4, %v1672_v4 }
 0x10f   :  { %v325_v58 = vrot.slane %v296_v26, %v324_v55 }
 0x111   :  { %1006 = vmatpush1.bf16.msra.mxu1 %v1523_v59  ;;  %1378 = vmatpush3.bf16.msra.mxu0 %v1527_v60  ;;  %v320_v60 = vsub.s32 5, %v1672_v4 }
 0x112   :  { %1007 = vmatprep.subr.bf16.mxu1 %v1530_v61  ;;  %1379 = vmatprep.subr.bf16.mxu0 %v1531_v62  ;;  %v317_v62 = vrot.slane %v296_v26, %v316_v57 }
 0x115   :  { %1008 = vmatpush1.bf16.msra.mxu1 %v1528_v63  ;;  %1380 = vmatpush3.bf16.msra.mxu0 %v1532_v0  ;;  %v321_v0 = vrot.slane %v296_v26, %v320_v60 }
 0x116   :  { %1009 = vmatprep.subr.bf16.mxu1 %v1535_v1  ;;  %1381 = vmatprep.subr.bf16.mxu0 %v1536_v2 }
 0x119   :  { %1010 = vmatpush1.bf16.msra.mxu1 %v1533_v3  ;;  %1382 = vmatpush3.bf16.msra.mxu0 %v1537_v5 }
 0x11a   :  { %1011 = vmatprep.subr.bf16.mxu1 %v1540_v6 }
 0x11c   :  { %1071 = vmatmul.mubr.bf16.vlgmr.msra.gmra.mxu0 %v1901_v40 }
 0x11d   :  { %1012 = vmatpush2.bf16.msra.mxu1 %v1538_v7 }
 0x11e   :  { %1013 = vmatprep.subr.bf16.mxu1 %v1543_v8 }
 0x121   :  { %1014 = vmatpush2.bf16.msra.mxu1 %v1541_v9 }
 0x122   :  { %1015 = vmatprep.subr.bf16.mxu1 %v1546_v10 }
 0x125   :  { %1016 = vmatpush2.bf16.msra.mxu1 %v1544_v12 }
 0x126   :  { %1017 = vmatprep.subr.bf16.mxu1 %v1549_v13 }
 0x129   :  { %1018 = vmatpush2.bf16.msra.mxu1 %v1547_v14 }
 0x12a   :  { %1019 = vmatprep.subr.bf16.mxu1 %v1552_v15 }
 0x12d   :  { %1020 = vmatpush2.bf16.msra.mxu1 %v1550_v16 }
 0x12e   :  { %1021 = vmatprep.subr.bf16.mxu1 %v1555_v17 }
 0x131   :  { %1022 = vmatpush2.bf16.msra.mxu1 %v1553_v18 }
 0x132   :  { %1023 = vmatprep.subr.bf16.mxu1 %v1558_v19 }
 0x135   :  { %1024 = vmatpush2.bf16.msra.mxu1 %v1556_v20 }
 0x136   :  { %1025 = vmatprep.subr.bf16.mxu1 %v1561_v21 }
 0x139   :  { %1026 = vmatpush2.bf16.msra.mxu1 %v1559_v22 }
 0x13c   :  { %1028 = vmatmul.mubr.bf16.vlgmr.msra.gmra.mxu1 %v1901_v40 }
 0x1bc   :  { %v943_v32 = vpop.f32.mrf.mxu1  ;;  %v986_v33 = vpop.f32.mrf.mxu0 }
 0x1bd   :  { %v944_v34 = vadd.f32 %v943_v32, %v301_v28  ;;  %v987_v35 = vadd.f32 %v986_v33, %v309_v29 }
 0x1be   :  { %v945_v36 = vpop.f32.mrf.mxu1  ;;  %v988_v37 = vpop.f32.mrf.mxu0 }
 0x1bf   :  { %v946_v38 = vadd.f32 %v945_v36, %v305_v30  ;;  %v989_v39 = vadd.f32 %v988_v37, %v313_v31  ;;  %v1079_v42 = vmax.f32 %v944_v34, 0.0  ;;  %v1081_v43 = vmax.f32 %v987_v35, 0.0 }
 0x1c0   :  { %v947_v40 = vpop.f32.mrf.mxu1  ;;  %v990_v41 = vpop.f32.mrf.mxu0 }
 0x1c1   :  { %v1080_v44 = vmax.f32 %v946_v38, 0.0  ;;  %v1082_v45 = vmax.f32 %v989_v39, 0.0 }
 0x1c2   :  { %v949_v25 = vpop.f32.mrf.mxu1  ;;  %v992_v46 = vpop.f32.mrf.mxu0 }
 0x1c3   :  { %v1359_v47 = vpack.c.bf16 %v1080_v44, %v1079_v42  ;;  %v1361_v48 = vpack.c.bf16 %v1082_v45, %v1081_v43 }
 0x1c5   :  { %v1117_v24 = vrot.slane %v1359_v47, %v1678_v11  ;;  %v1131_v49 = vrot.slane %v1361_v48, %v1678_v11 }
 0x1c7   :  { %v1139_v50 = vcombine.low %v1117_v24, %v1131_v49 }
 0x1c9   :  { %1216 = vst [vmem:[%s2063_s5] sm:$0xff] %v1139_v50 }
 0x1dc   :  { %v1383_v51 = vpop.f32.mrf.mxu0 }
 0x1de   :  { %v1384_v52 = vpop.f32.mrf.mxu0 }
 0x1df   :  { %v1385_v59 = vadd.f32 %v1384_v52, %v1383_v51 }
 0x1e0   :  { %v1386_v53 = vpop.f32.mrf.mxu0 }
 0x1e1   :  { %v1073_v63 = vadd.f32 %v1385_v59, %v325_v58 }
 0x1e2   :  { %v1387_v54 = vpop.f32.mrf.mxu0 }
 0x1e3   :  { %v1388_v56 = vadd.f32 %v1387_v54, %v1386_v53  ;;  %v1085_v6 = vmax.f32 %v1073_v63, 0.0 }
 0x1e5   :  { %v1076_v61 = vadd.f32 %v1388_v56, %v325_v58 }
 0x1e7   :  { %v1092_v2 = vmax.f32 %v1076_v61, 0.0 }
 0x1e9   :  { %v1099_v9 = vpack.c.bf16 %v1092_v2, %v1085_v6 }
 0x1eb   :  { %v1166_v4 = vrot.slane %v1099_v9, %v1678_v11 }
 0x1fc   :  { %v1029_v1 = vpop.f32.mrf.mxu1 }
 0x1fd   :  { %v1030_v3 = vadd.f32 %v1029_v1, %v317_v62 }
 0x1fe   :  { %v1031_v5 = vpop.f32.mrf.mxu1 }
 0x1ff   :  { %v1032_v7 = vadd.f32 %v1031_v5, %v321_v0  ;;  %v1083_v10 = vmax.f32 %v1030_v3, 0.0 }
 0x200   :  { %v1033_v8 = vpop.f32.mrf.mxu1 }
 0x201   :  { %v1084_v12 = vmax.f32 %v1032_v7, 0.0 }
 0x202   :  { %v1035_v13 = vpop.f32.mrf.mxu1 }
 0x203   :  { %v1363_v14 = vpack.c.bf16 %v1084_v12, %v1083_v10 }
 0x205   :  { %v1152_v15 = vrot.slane %v1363_v14, %v1678_v11 }
 0x207   :  { %v1174_v16 = vcombine.low %v1152_v15, %v1166_v4 }
 0x209   :  { %1192 = vst.msk [vmem:[#allocation7 + $0x8] sm:$0x3f] %vm1191_vm5, %v1174_v16 }
 0x210   :  { %v1227_v17 = vld [vmem:[#allocation7 + $0x8] sm:$0x3f] }
 0x211   :  { %1366 = vst [vmem:[%s2063_s5 + $0x8] sm:$0x3f] %v1227_v17 }
 0x212   :  { %1232 = vsyncpa [#allocation3], 1 }
 0x213   :  { %1233 = vsyncpa [#allocation5], 1 }

// kernel: conv_decoder_forward.6
= control target key start
LH: loop header
LB: loop body
LE: loop exit
PB: predicated region body
PF: predicated region fallthrough
CT: control target
= control target key end

     0   :  { %s1456_s9 = smov 0   ;;  %s1458_s10 = smov 0   ;;  %s1763_s0 = inlined_call_operand.vmem [shape: bf16[676,16], index: 0, kind: input, shape index: {}]   ;;  %s1764_s1 = inlined_call_operand.vmem [shape: bf16[16,288], index: 1, kind: input, shape index: {}]   ;;  %s1765_s2 = inlined_call_operand.vmem [shape: bf16[676,288], index: 2, kind: output, shape index: {}]  }
   0x1   :  { %s1460_s11 = smov 0  }
   0x2 LB: > { %s1469_s12 = sadd.s32 4294967295, %s1374_s11   ;;  %s1471_s13 = sadd.s32 1, %s1374_s11   ;;  %s1374_s11 = sphi %s1460_s11, %s1773_s11   ;;  %s1370_s10 = sphi %s1458_s10, %s1772_s10   ;;  %s1366_s9 = sphi %s1456_s9, %s1771_s9  }
   0x3   : > { %s63_s14 = ssub.s32 %s1374_s11, %s1471_s13  ;;  %s66_s15 = sadd.s32 1, %s1370_s10 }
   0x4   : > { %p64_p0 = scmp.eq.s32.totalorder %s63_s14, 0  ;;  %p76_p1 = scmp.ne.s32.totalorder %s1370_s10, %s1366_s9 }
   0x5   : > { %p77_p2 = scmp.eq.s32.totalorder %s1469_s12, 5  ;;  %p982_p3 = scmp.ge.s32.totalorder %s1374_s11, 1 }
   0x6   : > { %s1479_s16 = scalar_select %p64_p0, %s1370_s10, %s66_s15  }
   0x7   : > { %p1481_p4 = por %p77_p2, %p76_p1  ;;  %p121_p5 = scmp.lt.s32.totalorder %s1374_s11, 7 }
   0x9   : > { %p122_p6 = pnand %p982_p3, %p121_p5 }
   0xa   : > { %s1489_s20 = sshll.u32 (!%p122_p6), %s1469_s12, 4  ;;  %s143_s30 = sand.u32 (!%p122_p6), 1, %s1366_s9  }
   0xb   : > { %125 = sbr.rel (%p122_p6) target bundleno = 344 (0x158), region = 28  ;;  %p151_p7 = scmp.lt.s32.totalorder (!%p122_p6), %s1489_s20, 84 }
   0xc   : > { %s1121_s3 = smul.u32 (!%p122_p6), 192, %s143_s30 }
   0xe   : > { %s1519_s4 = scalar_lea.vmem (!%p122_p6), [#allocation2], %s1121_s3  }
  0x10   : > { %v1276_v0 = vld [vmem:[%s1764_s1 + $0x4] ss:$12 sps:$4 sm:$0xff]   ;;  %v1278_v1 = vld [vmem:[%s1764_s1] ss:$12 sps:$4 sm:$0xff]   ;;  %v1440_v2 = vmov 0   ;;  %s152_s25 = scalar_select %p151_p7, %s1489_s20, 84 }
  0x11   : > { %300 = vmatprep.mubr.bf16.mxu0 %v1440_v2  ;;  %360 = vmatprep.mubr.bf16.mxu1 %v1440_v2  ;;  %v1279_v3 = vld [vmem:[%s1764_s1 + $0x8] ss:$12 sps:$4 sm:$0xff]   ;;  %vm243_vm0 = vcmask 130048   ;;  %vm639_vm1 = vcmask 257024   ;;  %s679_s5 = ssub.s32 (%p1481_p4), 85, %s1489_s20  ;;  %s1122_s6 = smul.u32 (%p1481_p4), 192, %s1469_s12 }
  0x12   : > { %1119 = vmatprep.subr.bf16.mxu1 %v1276_v0  ;;  %282 = vmatprep.subr.bf16.mxu0 %v1276_v0  ;;  %s984_s26 = sshll.u32 %s152_s25, 2  ;;  %p680_p8 = scmp.lt.s32.totalorder (%p1481_p4), %s679_s5, 16 }
  0x13   : > { %1120 = vmatpush1.bf16.msra.mxu1 %v1278_v1  ;;  %283 = vmatpush1.bf16.msra.mxu0 %v1278_v1  ;;  %s154_s29 = scalar_lea.vmem %s1763_s0, %s984_s26  ;;  %s1576_s9 = scalar_lea.vmem (%p1481_p4), %s1765_s2, %s1122_s6  }
  0x14   : > { %1101 = vmatprep.subr.bf16.mxu1 %v1279_v3  ;;  %v1280_v4 = vld [vmem:[%s154_s29] sm:$0xff]   ;;  %v1281_v5 = vld [vmem:[%s154_s29 + $0x30] sm:$0xff]   ;;  %v1282_v6 = vld [vmem:[%s154_s29 + $0x8] sm:$0xff]  }
  0x15   : > { %v1283_v7 = vld [vmem:[%s154_s29 + $0x38] sm:$0xff]   ;;  %v1284_v8 = vld [vmem:[%s154_s29 + $0x10] sm:$0xff]   ;;  %v1286_v10 = vld [vmem:[%s154_s29 + $0x20] sm:$0xff]  }
  0x16   : > { %996 = vmatmul.mubr.msk.bf16.vlgmr.msra.gmra.mxu0 %vm243_vm0, %v1280_v4  ;;  %1002 = vmatmul.mubr.msk.bf16.vlgmr.msra.gmra.mxu1 %vm243_vm0, %v1281_v5  ;;  %v1285_v9 = vld [vmem:[%s154_s29 + $0x18] sm:$0xff]   ;;  %v1287_v11 = vld [vmem:[%s154_s29 + $0x28] sm:$0xff]  }
  0x17   : > { %310 = vmatprep.mubr.bf16.mxu0 %v1440_v2  ;;  %1102 = vmatpush3.bf16.msra.mxu1 %v1279_v3 }
  0x18   : > { %370 = vmatprep.mubr.bf16.mxu1 %v1440_v2 }
  0x1e   : > { %997 = vmatmul.mubr.msk.bf16.gmra.mxu0 %vm243_vm0, %v1282_v6  ;;  %1003 = vmatmul.mubr.msk.bf16.gmra.mxu1 %vm243_vm0, %v1283_v7 }
  0x1f   : > { %320 = vmatprep.mubr.bf16.mxu0 %v1440_v2  ;;  %1103 = vmatprep.mubr.msk.bf16.mxu1 %vm243_vm0, %v1280_v4 }
  0x26   : > { %998 = vmatmul.mubr.msk.bf16.gmra.mxu0 %vm243_vm0, %v1284_v8  ;;  %1104 = vmatmul.mubr.msk.bf16.vlgmr.msra.gmra.mxu1 %vm243_vm0, %v1282_v6 }
  0x27   : > { %330 = vmatprep.mubr.bf16.mxu0 %v1440_v2  ;;  %1107 = vmatprep.mubr.msk.bf16.mxu1 %vm243_vm0, %v1284_v8 }
  0x2e   : > { %999 = vmatmul.mubr.msk.bf16.gmra.mxu0 %vm243_vm0, %v1285_v9  ;;  %1108 = vmatmul.mubr.msk.bf16.gmra.mxu1 %vm243_vm0, %v1285_v9 }
  0x2f   : > { %340 = vmatprep.mubr.bf16.mxu0 %v1440_v2  ;;  %1111 = vmatprep.mubr.msk.bf16.mxu1 %vm243_vm0, %v1286_v10 }
  0x36   : > { %1000 = vmatmul.mubr.msk.bf16.gmra.mxu0 %vm243_vm0, %v1286_v10  ;;  %1112 = vmatmul.mubr.msk.bf16.gmra.mxu1 %vm243_vm0, %v1287_v11 }
  0x37   : > { %350 = vmatprep.mubr.bf16.mxu0 %v1440_v2  ;;  %1115 = vmatprep.mubr.msk.bf16.mxu1 %vm243_vm0, %v1281_v5 }
  0x3e   : > { %1001 = vmatmul.mubr.msk.bf16.gmra.mxu0 %vm243_vm0, %v1287_v11  ;;  %1116 = vmatmul.mubr.msk.bf16.gmra.mxu1 %vm243_vm0, %v1283_v7 }
  0xd6   : > { %v302_v12 = vpop.f32.mrf.mxu0  ;;  %v362_v13 = vpop.f32.mrf.mxu1 }
  0xd8   : > { %v304_v14 = vpop.f32.mrf.mxu0  ;;  %v364_v16 = vpop.f32.mrf.mxu1 }
  0xd9   : > { %v1060_v15 = vpack.c.bf16 %v304_v14, %v302_v12  ;;  %v1084_v17 = vpack.c.bf16 %v364_v16, %v362_v13 }
  0xda   : > { %v306_v18 = vpop.f32.mrf.mxu0  ;;  %v366_v19 = vpop.f32.mrf.mxu1 }
  0xdb   : > { %638 = vst [vmem:[%s1519_s4] sm:$0xff] %v1060_v15  ;;  %663 = vst [vmem:[%s1519_s4 + $0x90] sm:$0xff] %v1084_v17 }
  0xdc   : > { %v308_v20 = vpop.f32.mrf.mxu0  ;;  %v368_v22 = vpop.f32.mrf.mxu1 }
  0xdd   : > { %v1062_v21 = vpack.c.bf16 %v308_v20, %v306_v18  ;;  %v1086_v23 = vpack.c.bf16 %v368_v22, %v366_v19 }
  0xde   : > { %v312_v24 = vpop.f32.mrf.mxu0  ;;  %v372_v25 = vpop.f32.mrf.mxu1 }
  0xdf   : > { %641 = vst [vmem:[%s1519_s4 + $0xc] sm:$0xff] %v1062_v21  ;;  %665 = vst [vmem:[%s1519_s4 + $0x9c] sm:$0xff] %v1086_v23 }
  0xe0   : > { %v314_v26 = vpop.f32.mrf.mxu0  ;;  %v374_v28 = vpop.f32.mrf.mxu1 }
  0xe1   : > { %v1064_v27 = vpack.c.bf16 %v314_v26, %v312_v24  ;;  %v1088_v29 = vpack.c.bf16 %v374_v28, %v372_v25 }
  0xe2   : > { %v316_v30 = vpop.f32.mrf.mxu0  ;;  %v376_v31 = vpop.f32.mrf.mxu1 }
  0xe3   : > { %643 = vst [vmem:[%s1519_s4 + $0x18] sm:$0xff] %v1064_v27  ;;  %667 = vst [vmem:[%s1519_s4 + $0xa8] sm:$0xff] %v1088_v29 }
  0xe4   : > { %v318_v32 = vpop.f32.mrf.mxu0  ;;  %v378_v34 = vpop.f32.mrf.mxu1 }
  0xe5   : > { %v1066_v33 = vpack.c.bf16 %v318_v32, %v316_v30  ;;  %v1090_v35 = vpack.c.bf16 %v378_v34, %v376_v31 }
  0xe6   : > { %v322_v36 = vpop.f32.mrf.mxu0  ;;  %v1105_v37 = vpop.f32.mrf.mxu1 }
  0xe7   : > { %645 = vst [vmem:[%s1519_s4 + $0x24] sm:$0xff] %v1066_v33  ;;  %669 = vst [vmem:[%s1519_s4 + $0xb4] sm:$0xff] %v1090_v35  ;;  %v1065_v38 = vpack.c.bf16 %v1105_v37, %v1105_v37 }
  0xe8   : > { %v324_v39 = vpop.f32.mrf.mxu0  ;;  %v415_v41 = vpop.f32.mrf.mxu1 }
  0xe9   : > { %v1068_v40 = vpack.c.bf16 %v324_v39, %v322_v36  ;;  %644 = vst.msk [vmem:[%s1519_s4 + $0x20] sm:$0xf] %vm639_vm1, %v1065_v38  ;;  %v1061_v42 = vpack.c.bf16 %v415_v41, %v415_v41 }
  0xea   : > { %v326_v43 = vpop.f32.mrf.mxu0  ;;  %v1106_v44 = vpop.f32.mrf.mxu1 }
  0xeb   : > { %647 = vst [vmem:[%s1519_s4 + $0x30] sm:$0xff] %v1068_v40  ;;  %640 = vst.msk [vmem:[%s1519_s4 + $0x8] sm:$0xf] %vm639_vm1, %v1061_v42  ;;  %v1067_v45 = vpack.c.bf16 %v1106_v44, %v1106_v44 }
  0xec   : > { %v328_v46 = vpop.f32.mrf.mxu0  ;;  %v418_v48 = vpop.f32.mrf.mxu1 }
  0xed   : > { %v1070_v47 = vpack.c.bf16 %v328_v46, %v326_v43  ;;  %646 = vst.msk [vmem:[%s1519_s4 + $0x2c] sm:$0xf] %vm639_vm1, %v1067_v45  ;;  %v1063_v49 = vpack.c.bf16 %v418_v48, %v418_v48 }
  0xee   : > { %v332_v50 = vpop.f32.mrf.mxu0  ;;  %v1109_v51 = vpop.f32.mrf.mxu1 }
  0xef   : > { %649 = vst [vmem:[%s1519_s4 + $0x3c] sm:$0xff] %v1070_v47  ;;  %642 = vst.msk [vmem:[%s1519_s4 + $0x14] sm:$0xf] %vm639_vm1, %v1063_v49  ;;  %v1073_v52 = vpack.c.bf16 %v1109_v51, %v1109_v51 }
  0xf0   : > { %v334_v53 = vpop.f32.mrf.mxu0  ;;  %v431_v55 = vpop.f32.mrf.mxu1 }
  0xf1   : > { %v1072_v54 = vpack.c.bf16 %v334_v53, %v332_v50  ;;  %652 = vst.msk [vmem:[%s1519_s4 + $0x50] sm:$0xf] %vm639_vm1, %v1073_v52  ;;  %v1069_v56 = vpack.c.bf16 %v431_v55, %v431_v55 }
  0xf2   : > { %v336_v57 = vpop.f32.mrf.mxu0  ;;  %v1110_v58 = vpop.f32.mrf.mxu1 }
  0xf3   : > { %651 = vst [vmem:[%s1519_s4 + $0x48] sm:$0xff] %v1072_v54  ;;  %648 = vst.msk [vmem:[%s1519_s4 + $0x38] sm:$0xf] %vm639_vm1, %v1069_v56  ;;  %v1075_v59 = vpack.c.bf16 %v1110_v58, %v1110_v58 }
  0xf4   : > { %v338_v60 = vpop.f32.mrf.mxu0  ;;  %v434_v62 = vpop.f32.mrf.mxu1 }
  0xf5   : > { %v1074_v61 = vpack.c.bf16 %v338_v60, %v336_v57  ;;  %654 = vst.msk [vmem:[%s1519_s4 + $0x5c] sm:$0xf] %vm639_vm1, %v1075_v59  ;;  %v1071_v63 = vpack.c.bf16 %v434_v62, %v434_v62 }
  0xf6   : > { %v342_v0 = vpop.f32.mrf.mxu0  ;;  %v1113_v1 = vpop.f32.mrf.mxu1 }
  0xf7   : > { %653 = vst [vmem:[%s1519_s4 + $0x54] sm:$0xff] %v1074_v61  ;;  %650 = vst.msk [vmem:[%s1519_s4 + $0x44] sm:$0xf] %vm639_vm1, %v1071_v63  ;;  %v1081_v2 = vpack.c.bf16 %v1113_v1, %v1113_v1 }
  0xf8   : > { %v344_v3 = vpop.f32.mrf.mxu0  ;;  %v447_v5 = vpop.f32.mrf.mxu1 }
  0xf9   : > { %v1076_v4 = vpack.c.bf16 %v344_v3, %v342_v0  ;;  %660 = vst.msk [vmem:[%s1519_s4 + $0x80] sm:$0xf] %vm639_vm1, %v1081_v2  ;;  %v1077_v6 = vpack.c.bf16 %v447_v5, %v447_v5 }
  0xfa   : > { %v346_v7 = vpop.f32.mrf.mxu0  ;;  %v1114_v8 = vpop.f32.mrf.mxu1 }
  0xfb   : > { %655 = vst [vmem:[%s1519_s4 + $0x60] sm:$0xff] %v1076_v4  ;;  %656 = vst.msk [vmem:[%s1519_s4 + $0x68] sm:$0xf] %vm639_vm1, %v1077_v6  ;;  %v1083_v9 = vpack.c.bf16 %v1114_v8, %v1114_v8 }
  0xfc   : > { %v348_v10 = vpop.f32.mrf.mxu0  ;;  %v450_v12 = vpop.f32.mrf.mxu1 }
  0xfd   : > { %v1078_v11 = vpack.c.bf16 %v348_v10, %v346_v7  ;;  %662 = vst.msk [vmem:[%s1519_s4 + $0x8c] sm:$0xf] %vm639_vm1, %v1083_v9  ;;  %v1079_v13 = vpack.c.bf16 %v450_v12, %v450_v12 }
  0xfe   : > { %v352_v14 = vpop.f32.mrf.mxu0  ;;  %v1117_v15 = vpop.f32.mrf.mxu1 }
  0xff   : > { %657 = vst [vmem:[%s1519_s4 + $0x6c] sm:$0xff] %v1078_v11  ;;  %658 = vst.msk [vmem:[%s1519_s4 + $0x74] sm:$0xf] %vm639_vm1, %v1079_v13  ;;  %v1089_v16 = vpack.c.bf16 %v1117_v15, %v1117_v15 }
 0x100   : > { %v354_v17 = vpop.f32.mrf.mxu0  ;;  %v463_v19 = vpop.f32.mrf.mxu1 }
 0x101   : > { %v1080_v18 = vpack.c.bf16 %v354_v17, %v352_v14  ;;  %668 = vst.msk [vmem:[%s1519_s4 + $0xb0] sm:$0xf] %vm639_vm1, %v1089_v16  ;;  %v1085_v20 = vpack.c.bf16 %v463_v19, %v463_v19 }
 0x102   : > { %v356_v21 = vpop.f32.mrf.mxu0  ;;  %v1118_v22 = vpop.f32.mrf.mxu1 }
 0x103   : > { %659 = vst [vmem:[%s1519_s4 + $0x78] sm:$0xff] %v1080_v18  ;;  %664 = vst.msk [vmem:[%s1519_s4 + $0x98] sm:$0xf] %vm639_vm1, %v1085_v20  ;;  %v1091_v23 = vpack.c.bf16 %v1118_v22, %v1118_v22  ;;  %677 = sbr.rel (!%p1481_p4) target bundleno = 344 (0x158), region = 32 }
 0x104   : > { %v358_v24 = vpop.f32.mrf.mxu0  ;;  %v466_v26 = vpop.f32.mrf.mxu1 }
 0x105   : > { %v1082_v25 = vpack.c.bf16 %v358_v24, %v356_v21  ;;  %670 = vst.msk [vmem:[%s1519_s4 + $0xbc] sm:$0xf] %vm639_vm1, %v1091_v23  ;;  %v1087_v27 = vpack.c.bf16 %v466_v26, %v466_v26 }
 0x107   : > { %661 = vst [vmem:[%s1519_s4 + $0x84] sm:$0xff] %v1082_v25  ;;  %666 = vst.msk [vmem:[%s1519_s4 + $0xa4] sm:$0xf] %vm639_vm1, %v1087_v27 }
 0x108   : > { %s1775_s5 = smov (!%p680_p8, %s679_s5), 16 }
 0x109   : > { %s1046_s11 = smul.u32 192, %s1775_s5 }
 0x10b   : > { %p1050_p9 = scmp.eq.s32.totalorder %s1046_s11, 0 }
 0x10c   : > { %s693_s14 = scalar_lea.vmem (!%p1050_p9), %s1519_s4, 8 [#allocation2]   ;;  %s694_s15 = scalar_lea.vmem (!%p1050_p9), %s1576_s9, 8  }
 0x10d   : > { %690 = sbr.rel (%p1050_p9) target bundleno = 344 (0x158), region = 36  ;;  %s1584_s17 = sshrl.u32 (!%p1050_p9), %s1775_s5, 4 }
 0x10e   : > { %p1051_p10 = scmp.le.s32.totalorder (!%p1050_p9), %s1584_s17, 0 }
 0x112   : > { %907 = sbr.rel (%p1051_p10) target bundleno = 289 (0x121), region = 102  ;;  %s1767_s12 = smov (!%p1051_p10), %s1576_s9 }
 0x113   : > { %s1768_s18 = smov (!%p1051_p10), %s1519_s4  ;;  %s1595_s19 = smov (!%p1051_p10), 0  }
 0x114   : > { %s1597_s20 = smov (!%p1051_p10), 0  }
 0x117 LB: >> { %v705_v28 = vld [vmem:[%s1382_s18] sm:$0xff]  ;;  %v707_v29 = vld [vmem:[%s1382_s18 + $0xc] sm:$0xff]  ;;  %v709_v30 = vld [vmem:[%s1382_s18 + $0x18] sm:$0xff]  ;;  %s737_s21 = sadd.s32 1, %s1386_s19  ;;  %s699_s20 = sadd.s32 1, %s1390_s20   ;;  %s1390_s20 = sphi %s1597_s20, %s699_s20   ;;  %s1386_s19 = sphi %s1595_s19, %s1769_s19   ;;  %s1382_s18 = sphi %s1768_s18, %s742_s18   ;;  %s1378_s12 = sphi %s1767_s12, %s743_s12  }
 0x118   : >> { %706 = vst [vmem:[%s1378_s12] sm:$0xff] %v705_v28  ;;  %708 = vst [vmem:[%s1378_s12 + $0xc] sm:$0xff] %v707_v29  ;;  %v711_v31 = vld [vmem:[%s1382_s18 + $0x24] sm:$0xff]  ;;  %v713_v32 = vld [vmem:[%s1382_s18 + $0x30] sm:$0xff]  ;;  %p738_p11 = scmp.ge.s32.totalorder %s737_s21, %s1584_s17  ;;  %p698_p12 = scmp.ge.s32.totalorder %s699_s20, %s1584_s17 }
 0x119   : >> { %710 = vst [vmem:[%s1378_s12 + $0x18] sm:$0xff] %v709_v30  ;;  %v715_v33 = vld [vmem:[%s1382_s18 + $0x3c] sm:$0xff]  ;;  %712 = vst [vmem:[%s1378_s12 + $0x24] sm:$0xff] %v711_v31  ;;  %v717_v34 = vld [vmem:[%s1382_s18 + $0x48] sm:$0xff] }
 0x11a   : >> { %714 = vst [vmem:[%s1378_s12 + $0x30] sm:$0xff] %v713_v32  ;;  %716 = vst [vmem:[%s1378_s12 + $0x3c] sm:$0xff] %v715_v33  ;;  %v719_v35 = vld [vmem:[%s1382_s18 + $0x54] sm:$0xff]  ;;  %v721_v36 = vld [vmem:[%s1382_s18 + $0x60] sm:$0xff]  ;;  %s1777_s21 = smov (%p738_p11, %s737_s21), 0 }
 0x11b   : >> { %718 = vst [vmem:[%s1378_s12 + $0x48] sm:$0xff] %v717_v34  ;;  %720 = vst [vmem:[%s1378_s12 + $0x54] sm:$0xff] %v719_v35  ;;  %v723_v37 = vld [vmem:[%s1382_s18 + $0x6c] sm:$0xff]  ;;  %v725_v38 = vld [vmem:[%s1382_s18 + $0x78] sm:$0xff]  ;;  %s740_s22 = smul.u32 192, %s1777_s21  ;;  %s1769_s19 = smov %s1777_s21 }
 0x11c   : >> { %722 = vst [vmem:[%s1378_s12 + $0x60] sm:$0xff] %v721_v36  ;;  %v727_v39 = vld [vmem:[%s1382_s18 + $0x84] sm:$0xff]  ;;  %724 = vst [vmem:[%s1378_s12 + $0x6c] sm:$0xff] %v723_v37  ;;  %v729_v40 = vld [vmem:[%s1382_s18 + $0x90] sm:$0xff]  ;;  %701 = sbr.rel (!%p698_p12) target bundleno = 279 (0x117), region = 108 }
 0x11d   : >> { %726 = vst [vmem:[%s1378_s12 + $0x78] sm:$0xff] %v725_v38  ;;  %728 = vst [vmem:[%s1378_s12 + $0x84] sm:$0xff] %v727_v39  ;;  %v731_v41 = vld [vmem:[%s1382_s18 + $0x9c] sm:$0xff]  ;;  %v733_v42 = vld [vmem:[%s1382_s18 + $0xa8] sm:$0xff] }
 0x11e   : >> { %730 = vst [vmem:[%s1378_s12 + $0x90] sm:$0xff] %v729_v40  ;;  %732 = vst [vmem:[%s1378_s12 + $0x9c] sm:$0xff] %v731_v41  ;;  %v735_v43 = vld [vmem:[%s1382_s18 + $0xb4] sm:$0xff]  ;;  %s742_s18 = scalar_lea.vmem %s1519_s4, %s740_s22 [#allocation2]  }
 0x11f   : >> { %734 = vst [vmem:[%s1378_s12 + $0xa8] sm:$0xff] %v733_v42  ;;  %736 = vst [vmem:[%s1378_s12 + $0xb4] sm:$0xff] %v735_v43  ;;  %s743_s12 = scalar_lea.vmem %s1576_s9, %s740_s22  }
 0x121 PF: > { %s1655_s23 = sand.u32 15, %s1775_s5   ;;  %s1053_s24 = smul.u32 192, %s1584_s17 }
 0x122   : > { %p1055_p13 = scmp.le.s32.totalorder %s1655_s23, 0 }
 0x123   : > { %s1659_s25 = scalar_lea.vmem %s1519_s4, %s1053_s24 [#allocation2]   ;;  %s1662_s26 = scalar_lea.vmem %s1576_s9, %s1053_s24  }
 0x124   : > { %921 = sbr.rel (%p1055_p13) target bundleno = 305 (0x131), region = 113  ;;  %s1392_s27 = smov (!%p1055_p13), %s1662_s26  }
 0x125   : > { %s1396_s28 = smov (!%p1055_p13), %s1659_s25   ;;  %s1400_s29 = smov (!%p1055_p13), 0  }
 0x126   : > { %s1404_s30 = smov (!%p1055_p13), 0  }
 0x129 LB: >> { %v760_v44 = vld [vmem:[%s1398_s28] sm:$0xff]  ;;  %s762_s3 = sadd.s32 1, %s1402_s29  ;;  %s754_s30 = sadd.s32 1, %s1406_s30   ;;  %s1406_s30 = sphi %s1404_s30, %s754_s30   ;;  %s1402_s29 = sphi %s1400_s29, %s1401_s29   ;;  %s1398_s28 = sphi %s1396_s28, %s767_s28   ;;  %s1394_s27 = sphi %s1392_s27, %s768_s27  }
 0x12a   : >> { %761 = vst [vmem:[%s1394_s27] sm:$0xff] %v760_v44  ;;  %p763_p0 = scmp.ge.s32.totalorder %s762_s3, %s1655_s23  ;;  %p753_p1 = scmp.ge.s32.totalorder %s754_s30, %s1655_s23 }
 0x12c   : >> { %s1779_s3 = smov (%p763_p0, %s762_s3), 0  ;;  %756 = sbr.rel (!%p753_p1) target bundleno = 297 (0x129), region = 119 }
 0x12d   : >> { %s765_s5 = smul.u32 12, %s1779_s3  ;;  %s1401_s29 = smov %s1779_s3  }
 0x12f   : >> { %s767_s28 = scalar_lea.vmem %s1659_s25, %s765_s5 [#allocation2]   ;;  %s768_s27 = scalar_lea.vmem %s1662_s26, %s765_s5  }
 0x131 PF: > { %935 = sbr.rel (%p1051_p10) target bundleno = 330 (0x14a), region = 124  ;;  %s1683_s6 = smov (!%p1051_p10), 0  }
 0x132   : > { %s1685_s7 = smov (!%p1051_p10), 0  }
 0x136 LB: >> { %v781_v45 = vld [vmem:[%s1414_s14] sm:$0xf]  ;;  %v783_v46 = vld [vmem:[%s1414_s14 + $0xc] sm:$0xf]  ;;  %v785_v47 = vld [vmem:[%s1414_s14 + $0x18] sm:$0xf]  ;;  %s1422_s7 = sphi %s1685_s7, %s775_s7   ;;  %s1418_s6 = sphi %s1683_s6, %s1770_s6   ;;  %s1414_s14 = sphi %s693_s14, %s884_s14   ;;  %s1410_s15 = sphi %s694_s15, %s887_s15  }
 0x137   : >> { %782 = vst [vmem:[%s1410_s15] sm:$0xf] %v781_v45  ;;  %784 = vst [vmem:[%s1410_s15 + $0xc] sm:$0xf] %v783_v46  ;;  %v787_v48 = vld [vmem:[%s1414_s14 + $0x24] sm:$0xf]  ;;  %s813_s8 = sadd.s32 1, %s1418_s6 }
 0x138   : >> { %786 = vst [vmem:[%s1410_s15 + $0x18] sm:$0xf] %v785_v47  ;;  %v789_v49 = vld [vmem:[%s1414_s14 + $0x30] sm:$0xf]  ;;  %v791_v50 = vld [vmem:[%s1414_s14 + $0x3c] sm:$0xf]  ;;  %p814_p2 = scmp.ge.s32.totalorder %s813_s8, %s1584_s17 }
 0x139   : >> { %788 = vst [vmem:[%s1410_s15 + $0x24] sm:$0xf] %v787_v48  ;;  %790 = vst [vmem:[%s1410_s15 + $0x30] sm:$0xf] %v789_v49  ;;  %v793_v51 = vld [vmem:[%s1414_s14 + $0x48] sm:$0xf] }
 0x13a   : >> { %792 = vst [vmem:[%s1410_s15 + $0x3c] sm:$0xf] %v791_v50  ;;  %v795_v52 = vld [vmem:[%s1414_s14 + $0x54] sm:$0xf]  ;;  %v797_v53 = vld [vmem:[%s1414_s14 + $0x60] sm:$0xf] }
 0x13b   : >> { %794 = vst [vmem:[%s1410_s15 + $0x48] sm:$0xf] %v793_v51  ;;  %796 = vst [vmem:[%s1410_s15 + $0x54] sm:$0xf] %v795_v52  ;;  %v799_v54 = vld [vmem:[%s1414_s14 + $0x6c] sm:$0xf] }
 0x13c   : >> { %798 = vst [vmem:[%s1410_s15 + $0x60] sm:$0xf] %v797_v53  ;;  %v801_v55 = vld [vmem:[%s1414_s14 + $0x78] sm:$0xf]  ;;  %v803_v56 = vld [vmem:[%s1414_s14 + $0x84] sm:$0xf] }
 0x13d   : >> { %800 = vst [vmem:[%s1410_s15 + $0x6c] sm:$0xf] %v799_v54  ;;  %802 = vst [vmem:[%s1410_s15 + $0x78] sm:$0xf] %v801_v55  ;;  %v805_v57 = vld [vmem:[%s1414_s14 + $0x90] sm:$0xf] }
 0x13e   : >> { %804 = vst [vmem:[%s1410_s15 + $0x84] sm:$0xf] %v803_v56  ;;  %v807_v58 = vld [vmem:[%s1414_s14 + $0x9c] sm:$0xf]  ;;  %v809_v59 = vld [vmem:[%s1414_s14 + $0xa8] sm:$0xf] }
 0x13f   : >> { %806 = vst [vmem:[%s1410_s15 + $0x90] sm:$0xf] %v805_v57  ;;  %808 = vst [vmem:[%s1410_s15 + $0x9c] sm:$0xf] %v807_v58  ;;  %v811_v60 = vld [vmem:[%s1414_s14 + $0xb4] sm:$0xf] }
 0x140   : >> { %810 = vst [vmem:[%s1410_s15 + $0xa8] sm:$0xf] %v809_v59  ;;  %812 = vst [vmem:[%s1410_s15 + $0xb4] sm:$0xf] %v811_v60  ;;  %s1781_s8 = smov (%p814_p2, %s813_s8), 0  ;;  %s775_s7 = sadd.s32 1, %s1422_s7  }
 0x141   : >> { %s882_s11 = smul.u32 192, %s1781_s8  ;;  %p774_p3 = scmp.ge.s32.totalorder %s775_s7, %s1584_s17 }
 0x142   : >> { %s1770_s6 = smov %s1781_s8 }
 0x143   : >> { %s883_s12 = scalar_lea.vmem %s1519_s4, %s882_s11 [#allocation2]  ;;  %s886_s18 = scalar_lea.vmem %s1576_s9, %s882_s11 }
 0x144   : >> { %s884_s14 = scalar_lea.vmem %s883_s12, 8 [#allocation2]   ;;  %s887_s15 = scalar_lea.vmem %s886_s18, 8  }
 0x145   : > { %777 = sbr.rel (!%p774_p3) target bundleno = 310 (0x136), region = 130 }
 0x14a PF: > { %s890_s19 = scalar_lea.vmem %s1659_s25, 8 [#allocation2]   ;;  %s893_s20 = scalar_lea.vmem %s1662_s26, 8  }
 0x14b   : > { %949 = sbr.rel (%p1055_p13) target bundleno = 344 (0x158), region = 135  ;;  %s1424_s21 = smov (!%p1055_p13), %s893_s20  }
 0x14c   : > { %s1428_s22 = smov (!%p1055_p13), %s890_s19   ;;  %s1432_s24 = smov (!%p1055_p13), 0  }
 0x14d   : > { %s1436_s27 = smov (!%p1055_p13), 0  }
 0x150 LB: >> { %v836_v61 = vld [vmem:[%s1430_s22] sm:$0xf]  ;;  %s838_s4 = sadd.s32 1, %s1434_s24  ;;  %s830_s27 = sadd.s32 1, %s1438_s27   ;;  %s1438_s27 = sphi %s1436_s27, %s830_s27   ;;  %s1434_s24 = sphi %s1432_s24, %s1433_s24   ;;  %s1430_s22 = sphi %s1428_s22, %s896_s22   ;;  %s1426_s21 = sphi %s1424_s21, %s899_s21  }
 0x151   : >> { %837 = vst [vmem:[%s1426_s21] sm:$0xf] %v836_v61  ;;  %p839_p4 = scmp.ge.s32.totalorder %s838_s4, %s1655_s23  ;;  %p829_p5 = scmp.ge.s32.totalorder %s830_s27, %s1655_s23 }
 0x153   : >> { %s1783_s4 = smov (%p839_p4, %s838_s4), 0  ;;  %832 = sbr.rel (!%p829_p5) target bundleno = 336 (0x150), region = 141 }
 0x154   : >> { %s894_s9 = smul.u32 12, %s1783_s4  ;;  %s1433_s24 = smov %s1783_s4  }
 0x156   : >> { %s895_s14 = scalar_lea.vmem %s1659_s25, %s894_s9 [#allocation2]  ;;  %s898_s15 = scalar_lea.vmem %s1662_s26, %s894_s9 }
 0x157   : >> { %s896_s22 = scalar_lea.vmem %s895_s14, 8 [#allocation2]   ;;  %s899_s21 = scalar_lea.vmem %s898_s15, 8  }
 0x158 PF: > { %p9_p6 = scmp.ge.s32.totalorder %s1471_s13, 8   ;;  %s1771_s9 = smov %s1370_s10 }
 0x159   : > { %s1772_s10 = smov %s1479_s16  ;;  %s1773_s11 = smov %s1471_s13 }
 0x15a   :  { %11 = sbr.rel (!%p9_p6) target bundleno = 2 (0x2), region = 152 }

// kernel: conv_decoder_forward.7
= control target key start
LH: loop header
LB: loop body
LE: loop exit
PB: predicated region body
PF: predicated region fallthrough
CT: control target
= control target key end

     0   :  { %s2115_s9 = smov 0   ;;  %s2117_s10 = smov 0   ;;  %s2551_s0 = inlined_call_operand.vmem [shape: bf16[3600,8], index: 0, kind: input, shape index: {}]   ;;  %s2552_s1 = inlined_call_operand.vmem [shape: bf16[8,108], index: 1, kind: input, shape index: {}]   ;;  %s2553_s2 = inlined_call_operand.vmem [shape: bf16[3600,108], index: 2, kind: output, shape index: {}]  }
   0x1   :  { %s2119_s11 = smov 0  }
   0x2 LB: > { %s2128_s12 = sadd.s32 4294967295, %s2066_s11   ;;  %s2130_s13 = sadd.s32 1, %s2066_s11   ;;  %s2066_s11 = sphi %s2119_s11, %s2560_s11   ;;  %s2062_s10 = sphi %s2117_s10, %s2559_s10   ;;  %s2058_s9 = sphi %s2115_s9, %s2558_s9  }
   0x3   : > { %s63_s14 = ssub.s32 %s2066_s11, %s2130_s13  ;;  %s66_s15 = sadd.s32 1, %s2062_s10 }
   0x4   : > { %p64_p0 = scmp.eq.s32.totalorder %s63_s14, 0  ;;  %p76_p1 = scmp.ne.s32.totalorder %s2062_s10, %s2058_s9 }
   0x5   : > { %p77_p2 = scmp.eq.s32.totalorder %s2128_s12, 7  ;;  %p1573_p3 = scmp.ge.s32.totalorder %s2066_s11, 1 }
   0x6   : > { %s2138_s16 = scalar_select %p64_p0, %s2062_s10, %s66_s15  }
   0x7   : > { %p2140_p4 = por %p77_p2, %p76_p1  ;;  %p121_p5 = scmp.lt.s32.totalorder %s2066_s11, 9 }
   0x9   : > { %p122_p6 = pnand %p1573_p3, %p121_p5 }
   0xa   : > { %s2148_s20 = sshll.u32 (!%p122_p6), %s2128_s12, 6  ;;  %s143_s26 = sand.u32 (!%p122_p6), 1, %s2058_s9  }
   0xb   : > { %125 = sbr.rel (%p122_p6) target bundleno = 362 (0x16a), region = 28  ;;  %p151_p7 = scmp.lt.s32.totalorder (!%p122_p6), %s2148_s20, 449 }
   0xc   : > { %s1574_s27 = sshll.u32 (!%p122_p6), %s143_s26, 8 }
   0xd   : > { %s2222_s28 = scalar_lea.vmem (!%p122_p6), [#allocation2], %s1574_s27  }
  0x10   : > { %v230_v0 = vld [vmem:[%s2552_s1] sm:$0xf]  ;;  %vm488_vm0 = vcmask 1043456   ;;  %s152_s21 = scalar_select %p151_p7, %s2148_s20, 449  ;;  %vm391_vm1 = vcmask 64512   ;;  %vm1037_vm2 = vcmask 879616  }
  0x11   : > { %1890 = vmatprep.subr.msk.bf16.mxu0 %vm488_vm0, %v230_v0  ;;  %1891 = vmatprep.subr.msk.bf16.mxu1 %vm488_vm0, %v230_v0  ;;  %v490_v1 = vsel %vm488_vm0, %v230_v0, 0  ;;  %s1110_s29 = ssub.s32 (%p2140_p4), 450, %s2148_s20  ;;  %s1786_s30 = sshll.u32 (%p2140_p4), %s2128_s12, 8 }
  0x12   : > { %1823 = vmatpush3.bf16.msra.mxu0 %v490_v1  ;;  %1889 = vmatpush3.bf16.msra.mxu1 %v490_v1  ;;  %s1576_s22 = sshll.u32 %s152_s21, 2  ;;  %p1111_p8 = scmp.lt.s32.totalorder (%p2140_p4), %s1110_s29, 64 }
  0x13   : > { %s2155_s25 = scalar_lea.vmem %s2551_s0, %s1576_s22  ;;  %s2359_s5 = scalar_lea.vmem (%p2140_p4), %s2553_s2, %s1786_s30  }
  0x14   : > { %v1980_v2 = vld [vmem:[%s2155_s25] sm:$0xff]   ;;  %v1982_v4 = vld [vmem:[%s2155_s25 + $0x8] sm:$0xff]   ;;  %v1984_v6 = vld [vmem:[%s2155_s25 + $0x10] sm:$0xff]  }
  0x15   : > { %v1981_v3 = vld [vmem:[%s2155_s25 + $0x80] sm:$0xff]   ;;  %1824 = vmatprep.mubr.msk.bf16.mxu0 %vm391_vm1, %v1980_v2  ;;  %v1983_v5 = vld [vmem:[%s2155_s25 + $0x88] sm:$0xff]   ;;  %v1985_v7 = vld [vmem:[%s2155_s25 + $0x90] sm:$0xff]  }
  0x16   : > { %1856 = vmatprep.mubr.msk.bf16.mxu1 %vm391_vm1, %v1981_v3  ;;  %1825 = vmatmul.mubr.msk.bf16.vlgmr.msra.gmra.mxu0 %vm391_vm1, %v1982_v4  ;;  %v1986_v8 = vld [vmem:[%s2155_s25 + $0x18] sm:$0xff]   ;;  %v1988_v10 = vld [vmem:[%s2155_s25 + $0x20] sm:$0xff]   ;;  %v1990_v12 = vld [vmem:[%s2155_s25 + $0x28] sm:$0xff]  }
  0x17   : > { %1857 = vmatmul.mubr.msk.bf16.vlgmr.msra.gmra.mxu1 %vm391_vm1, %v1983_v5  ;;  %1828 = vmatprep.mubr.msk.bf16.mxu0 %vm391_vm1, %v1984_v6  ;;  %v1987_v9 = vld [vmem:[%s2155_s25 + $0x98] sm:$0xff]   ;;  %v1989_v11 = vld [vmem:[%s2155_s25 + $0xa0] sm:$0xff]   ;;  %v1991_v13 = vld [vmem:[%s2155_s25 + $0xa8] sm:$0xff]  }
  0x18   : > { %1860 = vmatprep.mubr.msk.bf16.mxu1 %vm391_vm1, %v1985_v7  ;;  %v1992_v14 = vld [vmem:[%s2155_s25 + $0x30] sm:$0xff]   ;;  %v1994_v16 = vld [vmem:[%s2155_s25 + $0x38] sm:$0xff]   ;;  %v1996_v18 = vld [vmem:[%s2155_s25 + $0x40] sm:$0xff]  }
  0x19   : > { %v1993_v15 = vld [vmem:[%s2155_s25 + $0xb0] sm:$0xff]   ;;  %v1995_v17 = vld [vmem:[%s2155_s25 + $0xb8] sm:$0xff]   ;;  %v1997_v19 = vld [vmem:[%s2155_s25 + $0xc0] sm:$0xff]  }
  0x1a   : > { %v1998_v20 = vld [vmem:[%s2155_s25 + $0x48] sm:$0xff]   ;;  %v2000_v22 = vld [vmem:[%s2155_s25 + $0x50] sm:$0xff]   ;;  %v2002_v24 = vld [vmem:[%s2155_s25 + $0x58] sm:$0xff]  }
  0x1b   : > { %v1999_v21 = vld [vmem:[%s2155_s25 + $0xc8] sm:$0xff]   ;;  %v2001_v23 = vld [vmem:[%s2155_s25 + $0xd0] sm:$0xff]   ;;  %v2003_v25 = vld [vmem:[%s2155_s25 + $0xd8] sm:$0xff]  }
  0x1c   : > { %v2004_v26 = vld [vmem:[%s2155_s25 + $0x60] sm:$0xff]   ;;  %v2006_v28 = vld [vmem:[%s2155_s25 + $0x68] sm:$0xff]   ;;  %v2008_v30 = vld [vmem:[%s2155_s25 + $0x70] sm:$0xff]  }
  0x1d   : > { %v2005_v27 = vld [vmem:[%s2155_s25 + $0xe0] sm:$0xff]   ;;  %v2007_v29 = vld [vmem:[%s2155_s25 + $0xe8] sm:$0xff]   ;;  %v2009_v31 = vld [vmem:[%s2155_s25 + $0xf0] sm:$0xff]  }
  0x1e   : > { %1829 = vmatmul.mubr.msk.bf16.gmra.mxu0 %vm391_vm1, %v1986_v8  ;;  %v2010_v32 = vld [vmem:[%s2155_s25 + $0x78] sm:$0xff]  }
  0x1f   : > { %1861 = vmatmul.mubr.msk.bf16.gmra.mxu1 %vm391_vm1, %v1987_v9  ;;  %1832 = vmatprep.mubr.msk.bf16.mxu0 %vm391_vm1, %v1988_v10  ;;  %v2011_v33 = vld [vmem:[%s2155_s25 + $0xf8] sm:$0xff]  }
  0x20   : > { %1864 = vmatprep.mubr.msk.bf16.mxu1 %vm391_vm1, %v1989_v11 }
  0x26   : > { %1833 = vmatmul.mubr.msk.bf16.gmra.mxu0 %vm391_vm1, %v1990_v12 }
  0x27   : > { %1865 = vmatmul.mubr.msk.bf16.gmra.mxu1 %vm391_vm1, %v1991_v13  ;;  %1836 = vmatprep.mubr.msk.bf16.mxu0 %vm391_vm1, %v1992_v14 }
  0x28   : > { %1868 = vmatprep.mubr.msk.bf16.mxu1 %vm391_vm1, %v1993_v15 }
  0x2e   : > { %1837 = vmatmul.mubr.msk.bf16.gmra.mxu0 %vm391_vm1, %v1994_v16 }
  0x2f   : > { %1869 = vmatmul.mubr.msk.bf16.gmra.mxu1 %vm391_vm1, %v1995_v17  ;;  %1840 = vmatprep.mubr.msk.bf16.mxu0 %vm391_vm1, %v1996_v18 }
  0x30   : > { %1872 = vmatprep.mubr.msk.bf16.mxu1 %vm391_vm1, %v1997_v19 }
  0x36   : > { %1841 = vmatmul.mubr.msk.bf16.gmra.mxu0 %vm391_vm1, %v1998_v20 }
  0x37   : > { %1873 = vmatmul.mubr.msk.bf16.gmra.mxu1 %vm391_vm1, %v1999_v21  ;;  %1844 = vmatprep.mubr.msk.bf16.mxu0 %vm391_vm1, %v2000_v22 }
  0x38   : > { %1876 = vmatprep.mubr.msk.bf16.mxu1 %vm391_vm1, %v2001_v23 }
  0x3e   : > { %1845 = vmatmul.mubr.msk.bf16.gmra.mxu0 %vm391_vm1, %v2002_v24 }
  0x3f   : > { %1877 = vmatmul.mubr.msk.bf16.gmra.mxu1 %vm391_vm1, %v2003_v25  ;;  %1848 = vmatprep.mubr.msk.bf16.mxu0 %vm391_vm1, %v2004_v26 }
  0x40   : > { %1880 = vmatprep.mubr.msk.bf16.mxu1 %vm391_vm1, %v2005_v27 }
  0x46   : > { %1849 = vmatmul.mubr.msk.bf16.gmra.mxu0 %vm391_vm1, %v2006_v28 }
  0x47   : > { %1881 = vmatmul.mubr.msk.bf16.gmra.mxu1 %vm391_vm1, %v2007_v29  ;;  %1852 = vmatprep.mubr.msk.bf16.mxu0 %vm391_vm1, %v2008_v30 }
  0x48   : > { %1884 = vmatprep.mubr.msk.bf16.mxu1 %vm391_vm1, %v2009_v31 }
  0x4e   : > { %1853 = vmatmul.mubr.msk.bf16.gmra.mxu0 %vm391_vm1, %v2010_v32 }
  0x4f   : > { %1885 = vmatmul.mubr.msk.bf16.gmra.mxu1 %vm391_vm1, %v2011_v33 }
  0xd6   : > { %v1826_v34 = vpop.f32.mrf.mxu0 }
  0xd7   : > { %v1724_v35 = vpack.c.bf16 %v1826_v34, %v1826_v34  ;;  %v1858_v36 = vpop.f32.mrf.mxu1 }
  0xd8   : > { %v1756_v37 = vpack.c.bf16 %v1858_v36, %v1858_v36  ;;  %v526_v38 = vpop.f32.mrf.mxu0 }
  0xd9   : > { %1040 = vst.msk [vmem:[%s2222_s28 + $0x8] sm:$0xf] %vm1037_vm2, %v1724_v35  ;;  %v1722_v39 = vpack.c.bf16 %v526_v38, %v526_v38  ;;  %v654_v40 = vpop.f32.mrf.mxu1 }
  0xda   : > { %1072 = vst.msk [vmem:[%s2222_s28 + $0x88] sm:$0xf] %vm1037_vm2, %v1756_v37  ;;  %v1754_v41 = vpack.c.bf16 %v654_v40, %v654_v40  ;;  %v1827_v42 = vpop.f32.mrf.mxu0 }
  0xdb   : > { %1038 = vst.msk [vmem:[%s2222_s28] sm:$0xf] %vm1037_vm2, %v1722_v39  ;;  %v1725_v43 = vpack.c.bf16 %v1827_v42, %v1827_v42  ;;  %v1859_v44 = vpop.f32.mrf.mxu1 }
  0xdc   : > { %1070 = vst.msk [vmem:[%s2222_s28 + $0x80] sm:$0xf] %vm1037_vm2, %v1754_v41  ;;  %v1757_v45 = vpack.c.bf16 %v1859_v44, %v1859_v44  ;;  %v529_v46 = vpop.f32.mrf.mxu0 }
  0xdd   : > { %1041 = vst.msk [vmem:[%s2222_s28 + $0xc] sm:$0xf] %vm1037_vm2, %v1725_v43  ;;  %v1723_v47 = vpack.c.bf16 %v529_v46, %v529_v46  ;;  %v657_v48 = vpop.f32.mrf.mxu1 }
  0xde   : > { %1073 = vst.msk [vmem:[%s2222_s28 + $0x8c] sm:$0xf] %vm1037_vm2, %v1757_v45  ;;  %v1755_v49 = vpack.c.bf16 %v657_v48, %v657_v48  ;;  %v1830_v50 = vpop.f32.mrf.mxu0 }
  0xdf   : > { %1039 = vst.msk [vmem:[%s2222_s28 + $0x4] sm:$0xf] %vm1037_vm2, %v1723_v47  ;;  %v1728_v51 = vpack.c.bf16 %v1830_v50, %v1830_v50  ;;  %v1862_v52 = vpop.f32.mrf.mxu1 }
  0xe0   : > { %1071 = vst.msk [vmem:[%s2222_s28 + $0x84] sm:$0xf] %vm1037_vm2, %v1755_v49  ;;  %v1760_v53 = vpack.c.bf16 %v1862_v52, %v1862_v52  ;;  %v542_v54 = vpop.f32.mrf.mxu0 }
  0xe1   : > { %1044 = vst.msk [vmem:[%s2222_s28 + $0x18] sm:$0xf] %vm1037_vm2, %v1728_v51  ;;  %v1726_v55 = vpack.c.bf16 %v542_v54, %v542_v54  ;;  %v670_v56 = vpop.f32.mrf.mxu1 }
  0xe2   : > { %1076 = vst.msk [vmem:[%s2222_s28 + $0x98] sm:$0xf] %vm1037_vm2, %v1760_v53  ;;  %v1758_v57 = vpack.c.bf16 %v670_v56, %v670_v56  ;;  %v1831_v58 = vpop.f32.mrf.mxu0 }
  0xe3   : > { %1042 = vst.msk [vmem:[%s2222_s28 + $0x10] sm:$0xf] %vm1037_vm2, %v1726_v55  ;;  %v1729_v59 = vpack.c.bf16 %v1831_v58, %v1831_v58  ;;  %v1863_v60 = vpop.f32.mrf.mxu1 }
  0xe4   : > { %1074 = vst.msk [vmem:[%s2222_s28 + $0x90] sm:$0xf] %vm1037_vm2, %v1758_v57  ;;  %v1761_v61 = vpack.c.bf16 %v1863_v60, %v1863_v60  ;;  %v545_v62 = vpop.f32.mrf.mxu0 }
  0xe5   : > { %1045 = vst.msk [vmem:[%s2222_s28 + $0x1c] sm:$0xf] %vm1037_vm2, %v1729_v59  ;;  %v1727_v63 = vpack.c.bf16 %v545_v62, %v545_v62  ;;  %v673_v0 = vpop.f32.mrf.mxu1 }
  0xe6   : > { %1077 = vst.msk [vmem:[%s2222_s28 + $0x9c] sm:$0xf] %vm1037_vm2, %v1761_v61  ;;  %v1759_v1 = vpack.c.bf16 %v673_v0, %v673_v0  ;;  %v1834_v2 = vpop.f32.mrf.mxu0 }
  0xe7   : > { %1043 = vst.msk [vmem:[%s2222_s28 + $0x14] sm:$0xf] %vm1037_vm2, %v1727_v63  ;;  %v1732_v3 = vpack.c.bf16 %v1834_v2, %v1834_v2  ;;  %v1866_v4 = vpop.f32.mrf.mxu1 }
  0xe8   : > { %1075 = vst.msk [vmem:[%s2222_s28 + $0x94] sm:$0xf] %vm1037_vm2, %v1759_v1  ;;  %v1764_v5 = vpack.c.bf16 %v1866_v4, %v1866_v4  ;;  %v558_v6 = vpop.f32.mrf.mxu0 }
  0xe9   : > { %1048 = vst.msk [vmem:[%s2222_s28 + $0x28] sm:$0xf] %vm1037_vm2, %v1732_v3  ;;  %v1730_v7 = vpack.c.bf16 %v558_v6, %v558_v6  ;;  %v686_v8 = vpop.f32.mrf.mxu1 }
  0xea   : > { %1080 = vst.msk [vmem:[%s2222_s28 + $0xa8] sm:$0xf] %vm1037_vm2, %v1764_v5  ;;  %v1762_v9 = vpack.c.bf16 %v686_v8, %v686_v8  ;;  %v1835_v10 = vpop.f32.mrf.mxu0 }
  0xeb   : > { %1046 = vst.msk [vmem:[%s2222_s28 + $0x20] sm:$0xf] %vm1037_vm2, %v1730_v7  ;;  %v1733_v11 = vpack.c.bf16 %v1835_v10, %v1835_v10  ;;  %v1867_v12 = vpop.f32.mrf.mxu1 }
  0xec   : > { %1078 = vst.msk [vmem:[%s2222_s28 + $0xa0] sm:$0xf] %vm1037_vm2, %v1762_v9  ;;  %v1765_v13 = vpack.c.bf16 %v1867_v12, %v1867_v12  ;;  %v561_v14 = vpop.f32.mrf.mxu0 }
  0xed   : > { %1049 = vst.msk [vmem:[%s2222_s28 + $0x2c] sm:$0xf] %vm1037_vm2, %v1733_v11  ;;  %v1731_v15 = vpack.c.bf16 %v561_v14, %v561_v14  ;;  %v689_v16 = vpop.f32.mrf.mxu1 }
  0xee   : > { %1081 = vst.msk [vmem:[%s2222_s28 + $0xac] sm:$0xf] %vm1037_vm2, %v1765_v13  ;;  %v1763_v17 = vpack.c.bf16 %v689_v16, %v689_v16  ;;  %v1838_v18 = vpop.f32.mrf.mxu0 }
  0xef   : > { %1047 = vst.msk [vmem:[%s2222_s28 + $0x24] sm:$0xf] %vm1037_vm2, %v1731_v15  ;;  %v1736_v19 = vpack.c.bf16 %v1838_v18, %v1838_v18  ;;  %v1870_v20 = vpop.f32.mrf.mxu1 }
  0xf0   : > { %1079 = vst.msk [vmem:[%s2222_s28 + $0xa4] sm:$0xf] %vm1037_vm2, %v1763_v17  ;;  %v1768_v21 = vpack.c.bf16 %v1870_v20, %v1870_v20  ;;  %v574_v22 = vpop.f32.mrf.mxu0 }
  0xf1   : > { %1052 = vst.msk [vmem:[%s2222_s28 + $0x38] sm:$0xf] %vm1037_vm2, %v1736_v19  ;;  %v1734_v23 = vpack.c.bf16 %v574_v22, %v574_v22  ;;  %v702_v24 = vpop.f32.mrf.mxu1 }
  0xf2   : > { %1084 = vst.msk [vmem:[%s2222_s28 + $0xb8] sm:$0xf] %vm1037_vm2, %v1768_v21  ;;  %v1766_v25 = vpack.c.bf16 %v702_v24, %v702_v24  ;;  %v1839_v26 = vpop.f32.mrf.mxu0 }
  0xf3   : > { %1050 = vst.msk [vmem:[%s2222_s28 + $0x30] sm:$0xf] %vm1037_vm2, %v1734_v23  ;;  %v1737_v27 = vpack.c.bf16 %v1839_v26, %v1839_v26  ;;  %v1871_v28 = vpop.f32.mrf.mxu1 }
  0xf4   : > { %1082 = vst.msk [vmem:[%s2222_s28 + $0xb0] sm:$0xf] %vm1037_vm2, %v1766_v25  ;;  %v1769_v29 = vpack.c.bf16 %v1871_v28, %v1871_v28  ;;  %v577_v30 = vpop.f32.mrf.mxu0 }
  0xf5   : > { %1053 = vst.msk [vmem:[%s2222_s28 + $0x3c] sm:$0xf] %vm1037_vm2, %v1737_v27  ;;  %v1735_v31 = vpack.c.bf16 %v577_v30, %v577_v30  ;;  %v705_v32 = vpop.f32.mrf.mxu1 }
  0xf6   : > { %1085 = vst.msk [vmem:[%s2222_s28 + $0xbc] sm:$0xf] %vm1037_vm2, %v1769_v29  ;;  %v1767_v33 = vpack.c.bf16 %v705_v32, %v705_v32  ;;  %v1842_v34 = vpop.f32.mrf.mxu0 }
  0xf7   : > { %1051 = vst.msk [vmem:[%s2222_s28 + $0x34] sm:$0xf] %vm1037_vm2, %v1735_v31  ;;  %v1740_v35 = vpack.c.bf16 %v1842_v34, %v1842_v34  ;;  %v1874_v36 = vpop.f32.mrf.mxu1 }
  0xf8   : > { %1083 = vst.msk [vmem:[%s2222_s28 + $0xb4] sm:$0xf] %vm1037_vm2, %v1767_v33  ;;  %v1772_v37 = vpack.c.bf16 %v1874_v36, %v1874_v36  ;;  %v590_v38 = vpop.f32.mrf.mxu0 }
  0xf9   : > { %1056 = vst.msk [vmem:[%s2222_s28 + $0x48] sm:$0xf] %vm1037_vm2, %v1740_v35  ;;  %v1738_v39 = vpack.c.bf16 %v590_v38, %v590_v38  ;;  %v718_v40 = vpop.f32.mrf.mxu1 }
  0xfa   : > { %1088 = vst.msk [vmem:[%s2222_s28 + $0xc8] sm:$0xf] %vm1037_vm2, %v1772_v37  ;;  %v1770_v41 = vpack.c.bf16 %v718_v40, %v718_v40  ;;  %v1843_v42 = vpop.f32.mrf.mxu0 }
  0xfb   : > { %1054 = vst.msk [vmem:[%s2222_s28 + $0x40] sm:$0xf] %vm1037_vm2, %v1738_v39  ;;  %v1741_v43 = vpack.c.bf16 %v1843_v42, %v1843_v42  ;;  %v1875_v44 = vpop.f32.mrf.mxu1 }
  0xfc   : > { %1086 = vst.msk [vmem:[%s2222_s28 + $0xc0] sm:$0xf] %vm1037_vm2, %v1770_v41  ;;  %v1773_v45 = vpack.c.bf16 %v1875_v44, %v1875_v44  ;;  %v593_v46 = vpop.f32.mrf.mxu0 }
  0xfd   : > { %1057 = vst.msk [vmem:[%s2222_s28 + $0x4c] sm:$0xf] %vm1037_vm2, %v1741_v43  ;;  %v1739_v47 = vpack.c.bf16 %v593_v46, %v593_v46  ;;  %v721_v48 = vpop.f32.mrf.mxu1 }
  0xfe   : > { %1089 = vst.msk [vmem:[%s2222_s28 + $0xcc] sm:$0xf] %vm1037_vm2, %v1773_v45  ;;  %v1771_v49 = vpack.c.bf16 %v721_v48, %v721_v48  ;;  %v1846_v50 = vpop.f32.mrf.mxu0 }
  0xff   : > { %1055 = vst.msk [vmem:[%s2222_s28 + $0x44] sm:$0xf] %vm1037_vm2, %v1739_v47  ;;  %v1744_v51 = vpack.c.bf16 %v1846_v50, %v1846_v50  ;;  %v1878_v52 = vpop.f32.mrf.mxu1 }
 0x100   : > { %1087 = vst.msk [vmem:[%s2222_s28 + $0xc4] sm:$0xf] %vm1037_vm2, %v1771_v49  ;;  %v1776_v53 = vpack.c.bf16 %v1878_v52, %v1878_v52  ;;  %v606_v54 = vpop.f32.mrf.mxu0 }
 0x101   : > { %1060 = vst.msk [vmem:[%s2222_s28 + $0x58] sm:$0xf] %vm1037_vm2, %v1744_v51  ;;  %v1742_v55 = vpack.c.bf16 %v606_v54, %v606_v54  ;;  %v734_v56 = vpop.f32.mrf.mxu1 }
 0x102   : > { %1092 = vst.msk [vmem:[%s2222_s28 + $0xd8] sm:$0xf] %vm1037_vm2, %v1776_v53  ;;  %v1774_v57 = vpack.c.bf16 %v734_v56, %v734_v56  ;;  %v1847_v58 = vpop.f32.mrf.mxu0 }
 0x103   : > { %1058 = vst.msk [vmem:[%s2222_s28 + $0x50] sm:$0xf] %vm1037_vm2, %v1742_v55  ;;  %v1745_v59 = vpack.c.bf16 %v1847_v58, %v1847_v58  ;;  %v1879_v60 = vpop.f32.mrf.mxu1 }
 0x104   : > { %1090 = vst.msk [vmem:[%s2222_s28 + $0xd0] sm:$0xf] %vm1037_vm2, %v1774_v57  ;;  %v1777_v61 = vpack.c.bf16 %v1879_v60, %v1879_v60  ;;  %v609_v62 = vpop.f32.mrf.mxu0 }
 0x105   : > { %1061 = vst.msk [vmem:[%s2222_s28 + $0x5c] sm:$0xf] %vm1037_vm2, %v1745_v59  ;;  %v1743_v63 = vpack.c.bf16 %v609_v62, %v609_v62  ;;  %v737_v0 = vpop.f32.mrf.mxu1 }
 0x106   : > { %1093 = vst.msk [vmem:[%s2222_s28 + $0xdc] sm:$0xf] %vm1037_vm2, %v1777_v61  ;;  %v1775_v1 = vpack.c.bf16 %v737_v0, %v737_v0  ;;  %v1850_v2 = vpop.f32.mrf.mxu0 }
 0x107   : > { %1059 = vst.msk [vmem:[%s2222_s28 + $0x54] sm:$0xf] %vm1037_vm2, %v1743_v63  ;;  %v1748_v3 = vpack.c.bf16 %v1850_v2, %v1850_v2  ;;  %v1882_v4 = vpop.f32.mrf.mxu1 }
 0x108   : > { %1091 = vst.msk [vmem:[%s2222_s28 + $0xd4] sm:$0xf] %vm1037_vm2, %v1775_v1  ;;  %v1780_v5 = vpack.c.bf16 %v1882_v4, %v1882_v4  ;;  %v622_v6 = vpop.f32.mrf.mxu0 }
 0x109   : > { %1064 = vst.msk [vmem:[%s2222_s28 + $0x68] sm:$0xf] %vm1037_vm2, %v1748_v3  ;;  %v1746_v7 = vpack.c.bf16 %v622_v6, %v622_v6  ;;  %v750_v8 = vpop.f32.mrf.mxu1 }
 0x10a   : > { %1096 = vst.msk [vmem:[%s2222_s28 + $0xe8] sm:$0xf] %vm1037_vm2, %v1780_v5  ;;  %v1778_v9 = vpack.c.bf16 %v750_v8, %v750_v8  ;;  %v1851_v10 = vpop.f32.mrf.mxu0 }
 0x10b   : > { %1062 = vst.msk [vmem:[%s2222_s28 + $0x60] sm:$0xf] %vm1037_vm2, %v1746_v7  ;;  %v1749_v11 = vpack.c.bf16 %v1851_v10, %v1851_v10  ;;  %v1883_v12 = vpop.f32.mrf.mxu1 }
 0x10c   : > { %1094 = vst.msk [vmem:[%s2222_s28 + $0xe0] sm:$0xf] %vm1037_vm2, %v1778_v9  ;;  %v1781_v13 = vpack.c.bf16 %v1883_v12, %v1883_v12  ;;  %v625_v14 = vpop.f32.mrf.mxu0 }
 0x10d   : > { %1065 = vst.msk [vmem:[%s2222_s28 + $0x6c] sm:$0xf] %vm1037_vm2, %v1749_v11  ;;  %v1747_v15 = vpack.c.bf16 %v625_v14, %v625_v14  ;;  %v753_v16 = vpop.f32.mrf.mxu1 }
 0x10e   : > { %1097 = vst.msk [vmem:[%s2222_s28 + $0xec] sm:$0xf] %vm1037_vm2, %v1781_v13  ;;  %v1779_v17 = vpack.c.bf16 %v753_v16, %v753_v16  ;;  %v1854_v18 = vpop.f32.mrf.mxu0 }
 0x10f   : > { %1063 = vst.msk [vmem:[%s2222_s28 + $0x64] sm:$0xf] %vm1037_vm2, %v1747_v15  ;;  %v1752_v19 = vpack.c.bf16 %v1854_v18, %v1854_v18  ;;  %v1886_v20 = vpop.f32.mrf.mxu1 }
 0x110   : > { %1095 = vst.msk [vmem:[%s2222_s28 + $0xe4] sm:$0xf] %vm1037_vm2, %v1779_v17  ;;  %v1784_v21 = vpack.c.bf16 %v1886_v20, %v1886_v20  ;;  %v638_v22 = vpop.f32.mrf.mxu0 }
 0x111   : > { %1068 = vst.msk [vmem:[%s2222_s28 + $0x78] sm:$0xf] %vm1037_vm2, %v1752_v19  ;;  %v1750_v23 = vpack.c.bf16 %v638_v22, %v638_v22  ;;  %v766_v24 = vpop.f32.mrf.mxu1 }
 0x112   : > { %1100 = vst.msk [vmem:[%s2222_s28 + $0xf8] sm:$0xf] %vm1037_vm2, %v1784_v21  ;;  %v1782_v25 = vpack.c.bf16 %v766_v24, %v766_v24  ;;  %v1855_v26 = vpop.f32.mrf.mxu0 }
 0x113   : > { %1066 = vst.msk [vmem:[%s2222_s28 + $0x70] sm:$0xf] %vm1037_vm2, %v1750_v23  ;;  %v1753_v27 = vpack.c.bf16 %v1855_v26, %v1855_v26  ;;  %v1887_v28 = vpop.f32.mrf.mxu1 }
 0x114   : > { %1098 = vst.msk [vmem:[%s2222_s28 + $0xf0] sm:$0xf] %vm1037_vm2, %v1782_v25  ;;  %v1785_v29 = vpack.c.bf16 %v1887_v28, %v1887_v28  ;;  %v641_v30 = vpop.f32.mrf.mxu0  ;;  %1108 = sbr.rel (!%p2140_p4) target bundleno = 362 (0x16a), region = 32 }
 0x115   : > { %1069 = vst.msk [vmem:[%s2222_s28 + $0x7c] sm:$0xf] %vm1037_vm2, %v1753_v27  ;;  %v1751_v31 = vpack.c.bf16 %v641_v30, %v641_v30  ;;  %v769_v32 = vpop.f32.mrf.mxu1 }
 0x116   : > { %1101 = vst.msk [vmem:[%s2222_s28 + $0xfc] sm:$0xf] %vm1037_vm2, %v1785_v29  ;;  %v1783_v33 = vpack.c.bf16 %v769_v32, %v769_v32 }
 0x117   : > { %1067 = vst.msk [vmem:[%s2222_s28 + $0x74] sm:$0xf] %vm1037_vm2, %v1751_v31 }
 0x118   : > { %1099 = vst.msk [vmem:[%s2222_s28 + $0xf4] sm:$0xf] %vm1037_vm2, %v1783_v33 }
 0x119   : > { %s2562_s29 = smov (!%p1111_p8, %s1110_s29), 64 }
 0x11a   : > { %s1707_s6 = sshll.u32 %s2562_s29, 6 }
 0x11b   : > { %p1710_p9 = scmp.eq.s32.totalorder %s1707_s6, 0 }
 0x11c   : > { %s2365_s7 = sshrl.u32 (!%p1710_p9), %s2562_s29, 6 }
 0x11d   : > { %1119 = sbr.rel (%p1710_p9) target bundleno = 362 (0x16a), region = 36  ;;  %p1711_p10 = scmp.le.s32.totalorder (!%p1710_p9), %s2365_s7, 0 }
 0x122   : > { %1526 = sbr.rel (%p1711_p10) target bundleno = 345 (0x159), region = 108  ;;  %s2555_s8 = smov (!%p1711_p10), %s2359_s5 }
 0x123   : > { %s2556_s9 = smov (!%p1711_p10), %s2222_s28  ;;  %s2374_s11 = smov (!%p1711_p10), 0  }
 0x124   : > { %s2376_s12 = smov (!%p1711_p10), 0  }
 0x127 LB: >> { %v1136_v34 = vld [vmem:[%s2074_s9] sm:$0xf]  ;;  %v1138_v35 = vld [vmem:[%s2074_s9 + $0x4] sm:$0xf]  ;;  %v1140_v36 = vld [vmem:[%s2074_s9 + $0x8] sm:$0xf]  ;;  %s2082_s12 = sphi %s2376_s12, %s1130_s12   ;;  %s2078_s11 = sphi %s2374_s11, %s2557_s11   ;;  %s2074_s9 = sphi %s2556_s9, %s1269_s9   ;;  %s2070_s8 = sphi %s2555_s8, %s1270_s8  }
 0x128   : >> { %1137 = vst [vmem:[%s2070_s8] sm:$0xf] %v1136_v34  ;;  %1139 = vst [vmem:[%s2070_s8 + $0x4] sm:$0xf] %v1138_v35  ;;  %v1142_v37 = vld [vmem:[%s2074_s9 + $0xc] sm:$0xf]  ;;  %s1264_s14 = sadd.s32 1, %s2078_s11 }
 0x129   : >> { %1141 = vst [vmem:[%s2070_s8 + $0x8] sm:$0xf] %v1140_v36  ;;  %v1144_v38 = vld [vmem:[%s2074_s9 + $0x10] sm:$0xf]  ;;  %v1146_v39 = vld [vmem:[%s2074_s9 + $0x14] sm:$0xf]  ;;  %p1265_p11 = scmp.ge.s32.totalorder %s1264_s14, %s2365_s7 }
 0x12a   : >> { %1143 = vst [vmem:[%s2070_s8 + $0xc] sm:$0xf] %v1142_v37  ;;  %1145 = vst [vmem:[%s2070_s8 + $0x10] sm:$0xf] %v1144_v38  ;;  %v1148_v40 = vld [vmem:[%s2074_s9 + $0x18] sm:$0xf] }
 0x12b   : >> { %1147 = vst [vmem:[%s2070_s8 + $0x14] sm:$0xf] %v1146_v39  ;;  %v1150_v41 = vld [vmem:[%s2074_s9 + $0x1c] sm:$0xf]  ;;  %v1152_v42 = vld [vmem:[%s2074_s9 + $0x20] sm:$0xf] }
 0x12c   : >> { %1149 = vst [vmem:[%s2070_s8 + $0x18] sm:$0xf] %v1148_v40  ;;  %1151 = vst [vmem:[%s2070_s8 + $0x1c] sm:$0xf] %v1150_v41  ;;  %v1154_v43 = vld [vmem:[%s2074_s9 + $0x24] sm:$0xf] }
 0x12d   : >> { %1153 = vst [vmem:[%s2070_s8 + $0x20] sm:$0xf] %v1152_v42  ;;  %v1156_v44 = vld [vmem:[%s2074_s9 + $0x28] sm:$0xf]  ;;  %v1158_v45 = vld [vmem:[%s2074_s9 + $0x2c] sm:$0xf] }
 0x12e   : >> { %1155 = vst [vmem:[%s2070_s8 + $0x24] sm:$0xf] %v1154_v43  ;;  %1157 = vst [vmem:[%s2070_s8 + $0x28] sm:$0xf] %v1156_v44  ;;  %v1160_v46 = vld [vmem:[%s2074_s9 + $0x30] sm:$0xf] }
 0x12f   : >> { %1159 = vst [vmem:[%s2070_s8 + $0x2c] sm:$0xf] %v1158_v45  ;;  %v1162_v47 = vld [vmem:[%s2074_s9 + $0x34] sm:$0xf]  ;;  %v1164_v48 = vld [vmem:[%s2074_s9 + $0x38] sm:$0xf] }
 0x130   : >> { %1161 = vst [vmem:[%s2070_s8 + $0x30] sm:$0xf] %v1160_v46  ;;  %1163 = vst [vmem:[%s2070_s8 + $0x34] sm:$0xf] %v1162_v47  ;;  %v1166_v49 = vld [vmem:[%s2074_s9 + $0x3c] sm:$0xf] }
 0x131   : >> { %1165 = vst [vmem:[%s2070_s8 + $0x38] sm:$0xf] %v1164_v48  ;;  %v1168_v50 = vld [vmem:[%s2074_s9 + $0x40] sm:$0xf]  ;;  %v1170_v51 = vld [vmem:[%s2074_s9 + $0x44] sm:$0xf] }
 0x132   : >> { %1167 = vst [vmem:[%s2070_s8 + $0x3c] sm:$0xf] %v1166_v49  ;;  %1169 = vst [vmem:[%s2070_s8 + $0x40] sm:$0xf] %v1168_v50  ;;  %v1172_v52 = vld [vmem:[%s2074_s9 + $0x48] sm:$0xf] }
 0x133   : >> { %1171 = vst [vmem:[%s2070_s8 + $0x44] sm:$0xf] %v1170_v51  ;;  %v1174_v53 = vld [vmem:[%s2074_s9 + $0x4c] sm:$0xf]  ;;  %v1176_v54 = vld [vmem:[%s2074_s9 + $0x50] sm:$0xf] }
 0x134   : >> { %1173 = vst [vmem:[%s2070_s8 + $0x48] sm:$0xf] %v1172_v52  ;;  %1175 = vst [vmem:[%s2070_s8 + $0x4c] sm:$0xf] %v1174_v53  ;;  %v1178_v55 = vld [vmem:[%s2074_s9 + $0x54] sm:$0xf] }
 0x135   : >> { %1177 = vst [vmem:[%s2070_s8 + $0x50] sm:$0xf] %v1176_v54  ;;  %v1180_v56 = vld [vmem:[%s2074_s9 + $0x58] sm:$0xf]  ;;  %v1182_v57 = vld [vmem:[%s2074_s9 + $0x5c] sm:$0xf] }
 0x136   : >> { %1179 = vst [vmem:[%s2070_s8 + $0x54] sm:$0xf] %v1178_v55  ;;  %1181 = vst [vmem:[%s2070_s8 + $0x58] sm:$0xf] %v1180_v56  ;;  %v1184_v58 = vld [vmem:[%s2074_s9 + $0x60] sm:$0xf] }
 0x137   : >> { %1183 = vst [vmem:[%s2070_s8 + $0x5c] sm:$0xf] %v1182_v57  ;;  %v1186_v59 = vld [vmem:[%s2074_s9 + $0x64] sm:$0xf]  ;;  %v1188_v60 = vld [vmem:[%s2074_s9 + $0x68] sm:$0xf] }
 0x138   : >> { %1185 = vst [vmem:[%s2070_s8 + $0x60] sm:$0xf] %v1184_v58  ;;  %1187 = vst [vmem:[%s2070_s8 + $0x64] sm:$0xf] %v1186_v59  ;;  %v1190_v61 = vld [vmem:[%s2074_s9 + $0x6c] sm:$0xf] }
 0x139   : >> { %1189 = vst [vmem:[%s2070_s8 + $0x68] sm:$0xf] %v1188_v60  ;;  %v1192_v62 = vld [vmem:[%s2074_s9 + $0x70] sm:$0xf]  ;;  %v1194_v63 = vld [vmem:[%s2074_s9 + $0x74] sm:$0xf] }
 0x13a   : >> { %1191 = vst [vmem:[%s2070_s8 + $0x6c] sm:$0xf] %v1190_v61  ;;  %1193 = vst [vmem:[%s2070_s8 + $0x70] sm:$0xf] %v1192_v62  ;;  %v1196_v0 = vld [vmem:[%s2074_s9 + $0x78] sm:$0xf] }
 0x13b   : >> { %1195 = vst [vmem:[%s2070_s8 + $0x74] sm:$0xf] %v1194_v63  ;;  %v1198_v1 = vld [vmem:[%s2074_s9 + $0x7c] sm:$0xf]  ;;  %v1200_v2 = vld [vmem:[%s2074_s9 + $0x80] sm:$0xf] }
 0x13c   : >> { %1197 = vst [vmem:[%s2070_s8 + $0x78] sm:$0xf] %v1196_v0  ;;  %1199 = vst [vmem:[%s2070_s8 + $0x7c] sm:$0xf] %v1198_v1  ;;  %v1202_v3 = vld [vmem:[%s2074_s9 + $0x84] sm:$0xf] }
 0x13d   : >> { %1201 = vst [vmem:[%s2070_s8 + $0x80] sm:$0xf] %v1200_v2  ;;  %v1204_v4 = vld [vmem:[%s2074_s9 + $0x88] sm:$0xf]  ;;  %v1206_v5 = vld [vmem:[%s2074_s9 + $0x8c] sm:$0xf] }
 0x13e   : >> { %1203 = vst [vmem:[%s2070_s8 + $0x84] sm:$0xf] %v1202_v3  ;;  %1205 = vst [vmem:[%s2070_s8 + $0x88] sm:$0xf] %v1204_v4  ;;  %v1208_v6 = vld [vmem:[%s2074_s9 + $0x90] sm:$0xf] }
 0x13f   : >> { %1207 = vst [vmem:[%s2070_s8 + $0x8c] sm:$0xf] %v1206_v5  ;;  %v1210_v7 = vld [vmem:[%s2074_s9 + $0x94] sm:$0xf]  ;;  %v1212_v8 = vld [vmem:[%s2074_s9 + $0x98] sm:$0xf] }
 0x140   : >> { %1209 = vst [vmem:[%s2070_s8 + $0x90] sm:$0xf] %v1208_v6  ;;  %1211 = vst [vmem:[%s2070_s8 + $0x94] sm:$0xf] %v1210_v7  ;;  %v1214_v9 = vld [vmem:[%s2074_s9 + $0x9c] sm:$0xf] }
 0x141   : >> { %1213 = vst [vmem:[%s2070_s8 + $0x98] sm:$0xf] %v1212_v8  ;;  %v1216_v10 = vld [vmem:[%s2074_s9 + $0xa0] sm:$0xf]  ;;  %v1218_v11 = vld [vmem:[%s2074_s9 + $0xa4] sm:$0xf] }
 0x142   : >> { %1215 = vst [vmem:[%s2070_s8 + $0x9c] sm:$0xf] %v1214_v9  ;;  %1217 = vst [vmem:[%s2070_s8 + $0xa0] sm:$0xf] %v1216_v10  ;;  %v1220_v12 = vld [vmem:[%s2074_s9 + $0xa8] sm:$0xf] }
 0x143   : >> { %1219 = vst [vmem:[%s2070_s8 + $0xa4] sm:$0xf] %v1218_v11  ;;  %v1222_v13 = vld [vmem:[%s2074_s9 + $0xac] sm:$0xf]  ;;  %v1224_v14 = vld [vmem:[%s2074_s9 + $0xb0] sm:$0xf] }
 0x144   : >> { %1221 = vst [vmem:[%s2070_s8 + $0xa8] sm:$0xf] %v1220_v12  ;;  %1223 = vst [vmem:[%s2070_s8 + $0xac] sm:$0xf] %v1222_v13  ;;  %v1226_v15 = vld [vmem:[%s2074_s9 + $0xb4] sm:$0xf] }
 0x145   : >> { %1225 = vst [vmem:[%s2070_s8 + $0xb0] sm:$0xf] %v1224_v14  ;;  %v1228_v16 = vld [vmem:[%s2074_s9 + $0xb8] sm:$0xf]  ;;  %v1230_v17 = vld [vmem:[%s2074_s9 + $0xbc] sm:$0xf] }
 0x146   : >> { %1227 = vst [vmem:[%s2070_s8 + $0xb4] sm:$0xf] %v1226_v15  ;;  %1229 = vst [vmem:[%s2070_s8 + $0xb8] sm:$0xf] %v1228_v16  ;;  %v1232_v18 = vld [vmem:[%s2074_s9 + $0xc0] sm:$0xf] }
 0x147   : >> { %1231 = vst [vmem:[%s2070_s8 + $0xbc] sm:$0xf] %v1230_v17  ;;  %v1234_v19 = vld [vmem:[%s2074_s9 + $0xc4] sm:$0xf]  ;;  %v1236_v20 = vld [vmem:[%s2074_s9 + $0xc8] sm:$0xf] }
 0x148   : >> { %1233 = vst [vmem:[%s2070_s8 + $0xc0] sm:$0xf] %v1232_v18  ;;  %1235 = vst [vmem:[%s2070_s8 + $0xc4] sm:$0xf] %v1234_v19  ;;  %v1238_v21 = vld [vmem:[%s2074_s9 + $0xcc] sm:$0xf] }
 0x149   : >> { %1237 = vst [vmem:[%s2070_s8 + $0xc8] sm:$0xf] %v1236_v20  ;;  %v1240_v22 = vld [vmem:[%s2074_s9 + $0xd0] sm:$0xf]  ;;  %v1242_v23 = vld [vmem:[%s2074_s9 + $0xd4] sm:$0xf] }
 0x14a   : >> { %1239 = vst [vmem:[%s2070_s8 + $0xcc] sm:$0xf] %v1238_v21  ;;  %1241 = vst [vmem:[%s2070_s8 + $0xd0] sm:$0xf] %v1240_v22  ;;  %v1244_v24 = vld [vmem:[%s2074_s9 + $0xd8] sm:$0xf] }
 0x14b   : >> { %1243 = vst [vmem:[%s2070_s8 + $0xd4] sm:$0xf] %v1242_v23  ;;  %v1246_v25 = vld [vmem:[%s2074_s9 + $0xdc] sm:$0xf]  ;;  %v1248_v26 = vld [vmem:[%s2074_s9 + $0xe0] sm:$0xf] }
 0x14c   : >> { %1245 = vst [vmem:[%s2070_s8 + $0xd8] sm:$0xf] %v1244_v24  ;;  %1247 = vst [vmem:[%s2070_s8 + $0xdc] sm:$0xf] %v1246_v25  ;;  %v1250_v27 = vld [vmem:[%s2074_s9 + $0xe4] sm:$0xf] }
 0x14d   : >> { %1249 = vst [vmem:[%s2070_s8 + $0xe0] sm:$0xf] %v1248_v26  ;;  %v1252_v28 = vld [vmem:[%s2074_s9 + $0xe8] sm:$0xf]  ;;  %v1254_v29 = vld [vmem:[%s2074_s9 + $0xec] sm:$0xf] }
 0x14e   : >> { %1251 = vst [vmem:[%s2070_s8 + $0xe4] sm:$0xf] %v1250_v27  ;;  %1253 = vst [vmem:[%s2070_s8 + $0xe8] sm:$0xf] %v1252_v28  ;;  %v1256_v30 = vld [vmem:[%s2074_s9 + $0xf0] sm:$0xf] }
 0x14f   : >> { %1255 = vst [vmem:[%s2070_s8 + $0xec] sm:$0xf] %v1254_v29  ;;  %v1258_v31 = vld [vmem:[%s2074_s9 + $0xf4] sm:$0xf]  ;;  %v1260_v32 = vld [vmem:[%s2074_s9 + $0xf8] sm:$0xf] }
 0x150   : >> { %1257 = vst [vmem:[%s2070_s8 + $0xf0] sm:$0xf] %v1256_v30  ;;  %1259 = vst [vmem:[%s2070_s8 + $0xf4] sm:$0xf] %v1258_v31  ;;  %v1262_v33 = vld [vmem:[%s2074_s9 + $0xfc] sm:$0xf] }
 0x151   : >> { %1261 = vst [vmem:[%s2070_s8 + $0xf8] sm:$0xf] %v1260_v32  ;;  %1263 = vst [vmem:[%s2070_s8 + $0xfc] sm:$0xf] %v1262_v33  ;;  %s2564_s14 = smov (%p1265_p11, %s1264_s14), 0  ;;  %s1130_s12 = sadd.s32 1, %s2082_s12  }
 0x152   : >> { %s1712_s15 = sshll.u32 %s2564_s14, 8  ;;  %p1129_p12 = scmp.ge.s32.totalorder %s1130_s12, %s2365_s7 }
 0x153   : >> { %s1269_s9 = scalar_lea.vmem %s2222_s28, %s1712_s15 [#allocation2]   ;;  %s1270_s8 = scalar_lea.vmem %s2359_s5, %s1712_s15  }
 0x154   : >> { %s2557_s11 = smov %s2564_s14  ;;  %1132 = sbr.rel (!%p1129_p12) target bundleno = 295 (0x127), region = 114 }
 0x159 PF: > { %s2533_s17 = sand.u32 63, %s2562_s29   ;;  %s1787_s18 = sshll.u32 %s2365_s7, 8 }
 0x15a   : > { %s1275_s19 = scalar_lea.vmem %s2222_s28, %s1787_s18 [#allocation2]   ;;  %s1277_s20 = scalar_lea.vmem %s2359_s5, %s1787_s18  }
 0x15b   : > { %p1717_p13 = scmp.le.s32.totalorder %s2533_s17, 0 }
 0x15c   : > { %s2084_s21 = smov (!%p1717_p13), %s1277_s20   ;;  %s2088_s22 = smov (!%p1717_p13), %s1275_s19  }
 0x15d   : > { %1540 = sbr.rel (%p1717_p13) target bundleno = 362 (0x16a), region = 119  ;;  %s2092_s23 = smov (!%p1717_p13), 0  }
 0x15e   : > { %s2096_s24 = smov (!%p1717_p13), 0  }
 0x162 LB: >> { %v1287_v34 = vld [vmem:[%s2090_s22] sm:$0xf]  ;;  %s1289_s25 = sadd.s32 1, %s2094_s23  ;;  %s1281_s24 = sadd.s32 1, %s2098_s24   ;;  %s2098_s24 = sphi %s2096_s24, %s1281_s24   ;;  %s2094_s23 = sphi %s2092_s23, %s2093_s23   ;;  %s2090_s22 = sphi %s2088_s22, %s1294_s22   ;;  %s2086_s21 = sphi %s2084_s21, %s1295_s21  }
 0x163   : >> { %1288 = vst [vmem:[%s2086_s21] sm:$0xf] %v1287_v34  ;;  %p1290_p0 = scmp.ge.s32.totalorder %s1289_s25, %s2533_s17  ;;  %p1280_p1 = scmp.ge.s32.totalorder %s1281_s24, %s2533_s17 }
 0x165   : >> { %s2566_s25 = smov (%p1290_p0, %s1289_s25), 0  ;;  %1283 = sbr.rel (!%p1280_p1) target bundleno = 354 (0x162), region = 125 }
 0x166   : >> { %s1718_s26 = sshll.u32 %s2566_s25, 2  ;;  %s2093_s23 = smov %s2566_s25  }
 0x167   : >> { %s1294_s22 = scalar_lea.vmem %s1275_s19, %s1718_s26 [#allocation2]   ;;  %s1295_s21 = scalar_lea.vmem %s1277_s20, %s1718_s26  }
 0x16a PF: > { %p9_p2 = scmp.ge.s32.totalorder %s2130_s13, 10   ;;  %s2558_s9 = smov %s2062_s10 }
 0x16b   : > { %s2559_s10 = smov %s2138_s16  ;;  %s2560_s11 = smov %s2130_s13 }
 0x16c   :  { %11 = sbr.rel (!%p9_p2) target bundleno = 2 (0x2), region = 136 }

</bundles_post_ra>
